<compile_context>
chip_gen: v5e
topology: v5e:2x2
jax: 0.10.0
libtpu: 0.0.40
codegen_flags: <defaults>
</compile_context>

<pallas_src>
import jax
import jax.numpy as jnp
from jax.experimental import pallas as pl
from jax.experimental.pallas import tpu as pltpu


def _attention_kernel(x_ref, wqkv_ref, bqkv_ref, wo_ref, bo_ref, o_ref):
    nb, c, hw = x_ref.shape                       # x block is channel-major (nb, C, HW)

    # channel-major -> token-major inside VMEM (XLU transpose, no HBM traffic)
    x_cm = x_ref[...]                             # (nb, C, HW)
    x_tm = jnp.transpose(x_cm, (0, 2, 1))         # (nb, HW, C)
    x2 = x_tm.reshape(nb * hw, c)                 # fold batch into the matmul M-dim

    # fused QKV projection: one (nb*HW, C) x (C, 3C) MXU pass.
    # 1/sqrt(d_head) is pre-folded into the Q columns of wqkv / bqkv.
    qkv = (jnp.dot(x2, wqkv_ref[...], preferred_element_type=jnp.float32)
           + bqkv_ref[...])                        # (nb*HW, 3C)
    q = qkv[:, 0 * c:1 * c].reshape(nb, hw, c)     # 128-lane-aligned slices (C = 128k)
    k = qkv[:, 1 * c:2 * c].reshape(nb, hw, c)
    v = qkv[:, 2 * c:3 * c].reshape(nb, hw, c)

    # scores + softmax over keys (dense; fine while the HW^2 scores fit VMEM).
    # TODO(synk): flash-style key-block loop once HW >= ~512 (v7x 64 MiB VMEM).
    s = jnp.einsum('bqd,bkd->bqk', q, k,
                   preferred_element_type=jnp.float32)        # (nb, HW, HW)
    m = jnp.max(s, axis=-1, keepdims=True)
    p = jnp.exp(s - m)
    l = jnp.sum(p, axis=-1, keepdims=True)
    # normalization deferred past the PV matmul: HW*C elements, not HW^2.
    # approx=False keeps the 1e-3 f32 tolerance; approx=True (EUP) is a further option.
    inv = pl.reciprocal(l, approx=False)                      # (nb, HW, 1)

    # attention output + out projection + residual
    pv = jnp.einsum('bqk,bkd->bqd', p, v,
                    preferred_element_type=jnp.float32)       # (nb, HW, C)
    out = (pv * inv).reshape(nb * hw, c)
    out = jnp.dot(out, wo_ref[...], preferred_element_type=jnp.float32) + bo_ref[...]
    out = out.reshape(nb, hw, c) + x_tm
    # token-major -> channel-major so the wrapper's output reshape is free
    o_ref[...] = jnp.transpose(out, (0, 2, 1))                # (nb, C, HW)


def _pick_nb(n, c, hw, vmem_budget_bytes=48 * 1024 * 1024):
    """Largest batch block per grid step that fits a conservative VMEM budget."""
    def fits(nb):
        act = nb * hw * c * 4                      # one f32 (nb, HW, C) tensor
        scores = nb * hw * hw * 4                  # one f32 (nb, HW, HW) tensor
        # x-in + out double-buffered (~4*act) + qkv/q/k/v/pv/x_tm live copies (~7*act)
        # + scores and exp(scores) (~2*scores)
        return 11 * act + 2 * scores <= vmem_budget_bytes
    nb = 1
    for cand in range(n, 0, -1):
        if n % cand == 0 and fits(cand):
            nb = cand
            break
    # keep >= 2 grid steps (v7x megacore) only when the half-block still keeps the
    # projection matmul M-dim (nb*HW) MXU-fat; otherwise one fat step wins.
    if n // nb == 1 and nb % 2 == 0 and (nb // 2) * hw >= 256:
        nb //= 2
    return nb


def prepare_attention_params(params, channels):
    """One-time weight prep (transpose, QKV fuse, fold 1/sqrt(d_head) into Q)."""
    c = channels
    scale = 1.0 / float(c) ** 0.5                          # n_heads = 1 -> d_head = C
    w_in = params['in_proj_w'].astype(jnp.float32)          # (3C, C) = [Wq; Wk; Wv]
    b_in = params['in_proj_b'].astype(jnp.float32)          # (3C,)
    col_scale = jnp.concatenate([jnp.full((c,), scale, jnp.float32),
                                 jnp.ones((2 * c,), jnp.float32)], axis=0)
    w_qkv = jnp.transpose(w_in) * col_scale[None, :]        # (C, 3C), Q cols pre-scaled
    b_qkv = (b_in * col_scale).reshape(1, 3 * c)            # (1, 3C)
    wo = jnp.transpose(params['out_proj_w'].astype(jnp.float32))   # (C, C)
    bo = params['out_proj_b'].astype(jnp.float32).reshape(1, c)    # (1, C)
    return {'w_qkv': w_qkv, 'b_qkv': b_qkv, 'wo': wo, 'bo': bo}


def attention_block_forward(x_nchw, prep):
    """x_nchw: (N, C, H, W) float32.  prep: output of prepare_attention_params."""
    N, C, H, W = x_nchw.shape
    HW = H * W
    nb = _pick_nb(N, C, HW)

    # free reshape (collapses contiguous trailing dims) — NO wrapper transpose.
    x = x_nchw.reshape(N, C, HW).astype(jnp.float32)

    grid_spec = pltpu.PrefetchScalarGridSpec(
        num_scalar_prefetch=0,
        grid=(N // nb,),
        in_specs=[
            pl.BlockSpec((nb, C, HW), lambda n: (n, 0, 0)),   # x, channel-major
            pl.BlockSpec((C, 3 * C), lambda n: (0, 0)),       # fused QKV weight
            pl.BlockSpec((1, 3 * C), lambda n: (0, 0)),       # fused QKV bias
            pl.BlockSpec((C, C), lambda n: (0, 0)),           # out proj weight
            pl.BlockSpec((1, C), lambda n: (0, 0)),           # out proj bias
        ],
        out_specs=pl.BlockSpec((nb, C, HW), lambda n: (n, 0, 0)),
    )
    out = pl.pallas_call(
        _attention_kernel,
        out_shape=jax.ShapeDtypeStruct((N, C, HW), jnp.float32),
        grid_spec=grid_spec,
        compiler_params=pltpu.CompilerParams(
            dimension_semantics=("parallel",),                # batch blocks independent
            vmem_limit_bytes=64 * 1024 * 1024),               # explicit (safe on v7x)
    )(x, prep['w_qkv'], prep['b_qkv'], prep['wo'], prep['bo'])

    return out.reshape(N, C, H, W)                            # free reshape back to NCHW


def ref_attention_block(x, p):
    """Pure-JAX reference mirroring the PyTorch forward (NCHW in/out)."""
    N, C, H, W = x.shape
    xt = jnp.transpose(x.reshape(N, C, H * W), (0, 2, 1))             # (N, HW, C)
    qkv = jnp.einsum('nld,ed->nle', xt, p['in_proj_w']) + p['in_proj_b']
    q, k, v = jnp.split(qkv, 3, axis=-1)
    s = jnp.einsum('nqd,nkd->nqk', q, k) / jnp.sqrt(jnp.float32(C))   # d_head = C
    a = jax.nn.softmax(s, axis=-1)
    o = jnp.einsum('nqk,nkd->nqd', a, v)
    o = jnp.einsum('nld,ed->nle', o, p['out_proj_w']) + p['out_proj_b']
    o = jnp.transpose(o, (0, 2, 1)).reshape(N, C, H, W)
    return o + x


if __name__ == "__main__":
    # GroupNorm(32, C) in __init__ implies C % 32 == 0; C=128 keeps lanes dense.
    N, C, H, W = 2, 128, 8, 8
    key = jax.random.PRNGKey(0)
    ks = jax.random.split(key, 5)
    params = {
        'in_proj_w': jax.random.normal(ks[0], (3 * C, C), jnp.float32) / C ** 0.5,
        'in_proj_b': 0.05 * jax.random.normal(ks[1], (3 * C,), jnp.float32),
        'out_proj_w': jax.random.normal(ks[2], (C, C), jnp.float32) / C ** 0.5,
        'out_proj_b': 0.05 * jax.random.normal(ks[3], (C,), jnp.float32),
    }
    x = jax.random.normal(ks[4], (N, C, H, W), jnp.float32)

    prep = prepare_attention_params(params, C)       # one-time weight transform
    fwd = jax.jit(attention_block_forward)
    out = jax.block_until_ready(fwd(x, prep))
    assert out.shape == (N, C, H, W)

    ref = ref_attention_block(x, params)
    err = float(jnp.max(jnp.abs(out - ref)))
    if not err < 1e-3:
        raise AssertionError(f"kernel mismatch vs reference, max abs err {err}")
    print("KERNEL_OK")
</pallas_src>

<mosaic_0001>
module attributes {stable_mosaic.version = 11 : i64} {
  func.func @_attention_kernel(%arg0: i32, %arg1: memref<2x128x64xf32, #tpu.memory_space<vmem>>, %arg2: memref<128x384xf32, #tpu.memory_space<vmem>>, %arg3: memref<1x384xf32, #tpu.memory_space<vmem>>, %arg4: memref<128x128xf32, #tpu.memory_space<vmem>>, %arg5: memref<1x128xf32, #tpu.memory_space<vmem>>, %arg6: memref<2x128x64xf32, #tpu.memory_space<vmem>>) attributes {dimension_semantics = [#tpu.dimension_semantics<parallel>], iteration_bounds = array<i64: 1>, scalar_prefetch = 0 : i64, scratch_operands = 0 : i64, tpu.core_type = #tpu.core_type<tc>, window_params = [{transform_indices = @transform_0, window_bounds = array<i64: 2, 128, 64>}, {pipeline_mode = #tpu.pipeline_mode<synchronous>, transform_indices = @transform_1, window_bounds = array<i64: 128, 384>}, {pipeline_mode = #tpu.pipeline_mode<synchronous>, transform_indices = @transform_2, window_bounds = array<i64: 1, 384>}, {pipeline_mode = #tpu.pipeline_mode<synchronous>, transform_indices = @transform_3, window_bounds = array<i64: 128, 128>}, {pipeline_mode = #tpu.pipeline_mode<synchronous>, transform_indices = @transform_4, window_bounds = array<i64: 1, 128>}, {transform_indices = @transform_5, window_bounds = array<i64: 2, 128, 64>}]} {
    %c0 = arith.constant 0 : index
    %c0_0 = arith.constant 0 : index
    %c0_1 = arith.constant 0 : index
    %0 = vector.load %arg1[%c0, %c0_0, %c0_1] : memref<2x128x64xf32, #tpu.memory_space<vmem>>, vector<2x128x64xf32>
    %1 = tpu.transpose %0, [0, 2, 1] : vector<2x128x64xf32> -> vector<2x64x128xf32>
    %2 = vector.shape_cast %1 : vector<2x64x128xf32> to vector<128x128xf32>
    %c0_2 = arith.constant 0 : index
    %c0_3 = arith.constant 0 : index
    %3 = vector.load %arg2[%c0_2, %c0_3] : memref<128x384xf32, #tpu.memory_space<vmem>>, vector<128x384xf32>
    %cst = arith.constant dense<0.000000e+00> : vector<128x384xf32>
    %4 = tpu.matmul %2, %3, %cst {dimension_numbers = #tpu.dot_dimension_numbers<[1], [0], [0], [1], [0, 0, 1, 1], [], []>} : vector<128x128xf32>, vector<128x384xf32>, vector<128x384xf32> -> vector<128x384xf32>
    %c0_4 = arith.constant 0 : index
    %c0_5 = arith.constant 0 : index
    %5 = vector.load %arg3[%c0_4, %c0_5] : memref<1x384xf32, #tpu.memory_space<vmem>>, vector<1x384xf32>
    %6 = vector.broadcast %5 : vector<1x384xf32> to vector<128x384xf32>
    %7 = arith.addf %4, %6 : vector<128x384xf32>
    %8 = vector.extract_strided_slice %7 {offsets = [0, 0], sizes = [128, 128], strides = [1, 1]} : vector<128x384xf32> to vector<128x128xf32>
    %9 = vector.shape_cast %8 : vector<128x128xf32> to vector<2x64x128xf32>
    %10 = vector.extract_strided_slice %7 {offsets = [0, 128], sizes = [128, 128], strides = [1, 1]} : vector<128x384xf32> to vector<128x128xf32>
    %11 = vector.shape_cast %10 : vector<128x128xf32> to vector<2x64x128xf32>
    %12 = vector.extract_strided_slice %7 {offsets = [0, 256], sizes = [128, 128], strides = [1, 1]} : vector<128x384xf32> to vector<128x128xf32>
    %13 = vector.shape_cast %12 : vector<128x128xf32> to vector<2x64x128xf32>
    "tpu.trace_start"() <{level = 10 : i32, message = "bqd,bkd->bqk"}> : () -> ()
    %cst_6 = arith.constant dense<0.000000e+00> : vector<2x64x64xf32>
    %14 = tpu.matmul %9, %11, %cst_6 {dimension_numbers = #tpu.dot_dimension_numbers<[2], [2], [1], [1], [0, 0, 0, 1, 1, 1], [0], [0]>} : vector<2x64x128xf32>, vector<2x64x128xf32>, vector<2x64x64xf32> -> vector<2x64x64xf32>
    "tpu.trace_stop"() : () -> ()
    %cst_7 = arith.constant dense<0xFF800000> : vector<2x64xf32>
    %15 = vector.multi_reduction <maximumf>, %14, %cst_7 [2] : vector<2x64x64xf32> to vector<2x64xf32>
    %16 = vector.shape_cast %15 : vector<2x64xf32> to vector<2x64x1xf32>
    %17 = vector.broadcast %16 : vector<2x64x1xf32> to vector<2x64x64xf32>
    %18 = arith.subf %14, %17 : vector<2x64x64xf32>
    %19 = math.exp %18 : vector<2x64x64xf32>
    %cst_8 = arith.constant dense<0.000000e+00> : vector<2x64xf32>
    %20 = vector.multi_reduction <add>, %19, %cst_8 [2] : vector<2x64x64xf32> to vector<2x64xf32>
    %21 = vector.shape_cast %20 : vector<2x64xf32> to vector<2x64x1xf32>
    %22 = tpu.reciprocal %21 : vector<2x64x1xf32> -> vector<2x64x1xf32>
    "tpu.trace_start"() <{level = 10 : i32, message = "bqk,bkd->bqd"}> : () -> ()
    %cst_9 = arith.constant dense<0.000000e+00> : vector<2x64x128xf32>
    %23 = tpu.matmul %19, %13, %cst_9 {dimension_numbers = #tpu.dot_dimension_numbers<[2], [1], [1], [2], [0, 0, 0, 1, 1, 2], [0], [0]>} : vector<2x64x64xf32>, vector<2x64x128xf32>, vector<2x64x128xf32> -> vector<2x64x128xf32>
    "tpu.trace_stop"() : () -> ()
    %24 = vector.broadcast %22 : vector<2x64x1xf32> to vector<2x64x128xf32>
    %25 = arith.mulf %23, %24 : vector<2x64x128xf32>
    %26 = vector.shape_cast %25 : vector<2x64x128xf32> to vector<128x128xf32>
    %c0_10 = arith.constant 0 : index
    %c0_11 = arith.constant 0 : index
    %27 = vector.load %arg4[%c0_10, %c0_11] : memref<128x128xf32, #tpu.memory_space<vmem>>, vector<128x128xf32>
    %cst_12 = arith.constant dense<0.000000e+00> : vector<128x128xf32>
    %28 = tpu.matmul %26, %27, %cst_12 {dimension_numbers = #tpu.dot_dimension_numbers<[1], [0], [0], [1], [0, 0, 1, 1], [], []>} : vector<128x128xf32>, vector<128x128xf32>, vector<128x128xf32> -> vector<128x128xf32>
    %c0_13 = arith.constant 0 : index
    %c0_14 = arith.constant 0 : index
    %29 = vector.load %arg5[%c0_13, %c0_14] : memref<1x128xf32, #tpu.memory_space<vmem>>, vector<1x128xf32>
    %30 = vector.broadcast %29 : vector<1x128xf32> to vector<128x128xf32>
    %31 = arith.addf %28, %30 : vector<128x128xf32>
    %32 = vector.shape_cast %31 : vector<128x128xf32> to vector<2x64x128xf32>
    %33 = arith.addf %32, %1 : vector<2x64x128xf32>
    %34 = tpu.transpose %33, [0, 2, 1] : vector<2x64x128xf32> -> vector<2x128x64xf32>
    %c0_15 = arith.constant 0 : index
    %c0_16 = arith.constant 0 : index
    %c0_17 = arith.constant 0 : index
    %35 = vector.load %arg6[%c0_15, %c0_16, %c0_17] : memref<2x128x64xf32, #tpu.memory_space<vmem>>, vector<2x128x64xf32>
    tpu.vector_store %arg6[%c0_15, %c0_16, %c0_17], %34 {strides = array<i32>} : memref<2x128x64xf32, #tpu.memory_space<vmem>>, vector<2x128x64xf32>,
    return
  }
  func.func @transform_0(%arg0: i32) -> (i32, i32, i32) {
    %c0_i32 = arith.constant 0 : i32
    %c0_i32_0 = arith.constant 0 : i32
    %c0_i32_1 = arith.constant 0 : i32
    return %arg0, %c0_i32, %c0_i32_0 : i32, i32, i32
  }
  func.func @transform_1(%arg0: i32) -> (i32, i32) {
    %c0_i32 = arith.constant 0 : i32
    %c0_i32_0 = arith.constant 0 : i32
    %c0_i32_1 = arith.constant 0 : i32
    return %c0_i32, %c0_i32_0 : i32, i32
  }
  func.func @transform_2(%arg0: i32) -> (i32, i32) {
    %c0_i32 = arith.constant 0 : i32
    %c0_i32_0 = arith.constant 0 : i32
    %c0_i32_1 = arith.constant 0 : i32
    return %c0_i32, %c0_i32_0 : i32, i32
  }
  func.func @transform_3(%arg0: i32) -> (i32, i32) {
    %c0_i32 = arith.constant 0 : i32
    %c0_i32_0 = arith.constant 0 : i32
    %c0_i32_1 = arith.constant 0 : i32
    return %c0_i32, %c0_i32_0 : i32, i32
  }
  func.func @transform_4(%arg0: i32) -> (i32, i32) {
    %c0_i32 = arith.constant 0 : i32
    %c0_i32_0 = arith.constant 0 : i32
    %c0_i32_1 = arith.constant 0 : i32
    return %c0_i32, %c0_i32_0 : i32, i32
  }
  func.func @transform_5(%arg0: i32) -> (i32, i32, i32) {
    %c0_i32 = arith.constant 0 : i32
    %c0_i32_0 = arith.constant 0 : i32
    %c0_i32_1 = arith.constant 0 : i32
    return %arg0, %c0_i32, %c0_i32_0 : i32, i32, i32
  }
}

</mosaic_0001>

<bundles_post_ra>
// kernel: attention_block_forward.1
= control target key start
LH: loop header
LB: loop body
LE: loop exit
PB: predicated region body
PF: predicated region fallthrough
CT: control target
= control target key end

     0   :  { %10 = vsyncpa [#allocation3], 0  ;;  %s2011_s0 = inlined_call_operand.vmem [shape: f32[2,128,64], index: 0, kind: input, shape index: {}]   ;;  %s2012_s1 = inlined_call_operand.vmem [shape: f32[128,384], index: 1, kind: input, shape index: {}]   ;;  %s2013_s2 = inlined_call_operand.vmem [shape: f32[1,384], index: 2, kind: input, shape index: {}]   ;;  %s2014_s3 = inlined_call_operand.hbm [shape: f32[128,128], index: 3, kind: input, shape index: {}]   ;;  %s2015_s4 = inlined_call_operand.hbm [shape: f32[1,128], index: 4, kind: input, shape index: {}]   ;;  %s2016_s5 = inlined_call_operand.vmem [shape: f32[2,128,64], index: 5, kind: output, shape index: {}]  }
   0x1   :  { %s22_s20 = sshll.u32 %s2014_s3, 4  ;;  %s23_s20 = int_to_ptr.hbm [resolvable:$true] %s22_s20 }
   0x2   :  { %11 = vsyncpa [#allocation5], 0  ;;  %s1351_s21 = smov [#allocation2]   ;;  %s36_s25 = sshll.u32 %s2015_s4, 4  ;;  %s37_s25 = int_to_ptr.hbm [resolvable:$true] %s36_s25 }
   0x3   :  { %s24_s22 = sshll.u32 %s1351_s21, 4  ;;  %s1352_s26 = smov 128   ;;  %s25_s22 = int_to_ptr.vmem [resolvable:$true] %s24_s22 }
   0x4   :  { %s1353_s27 = smov 8   ;;  %s1354_s28 = smov [#allocation4]  }
   0x5   :  { %30 = dma.hbm_to_vmem [thread:$0]  %s23_s20, 2048, %s25_s22, [#allocation3], %s1352_s26, %s1352_s26, %s1353_s27  }
   0x6   :  { %s38_s29 = sshll.u32 %s1354_s28, 4  ;;  %s39_s29 = int_to_ptr.vmem [resolvable:$true] %s38_s29 }
   0x7   :  { %41 = dma.hbm_to_vmem [thread:$0]  %s37_s25, 16, %s39_s29, [#allocation5]  }
   0x8   :  { %1347 = dma.done.wait [#allocation3], 2048  }
   0x9   :  { %1348 = vsyncadd [#allocation3], 4294965248 }
   0xa   :  { %1349 = dma.done.wait [#allocation5], 16  }
   0xb   :  { %1350 = vsyncadd [#allocation5], 4294967280  ;;  %v66_v0 = vld [vmem:[%s2011_s0 + $0x80] sm:$0xff]  ;;  %v67_v2 = vld [vmem:[%s2011_s0 + $0x88] sm:$0xff]  ;;  %vm479_vm0 = vcmask 523264  }
   0xc   :  { %v50_v1 = vld [vmem:[%s2011_s0] sm:$0xff]  ;;  %114 = vxpose.xlu1.b32.start [1/16] (narrow) %v66_v0, 64  ;;  %v51_v3 = vld [vmem:[%s2011_s0 + $0x8] sm:$0xff]  ;;  %v68_v4 = vld [vmem:[%s2011_s0 + $0x90] sm:$0xff] }
   0xd   :  { %82 = vxpose.xlu0.b32.start [1/16] (narrow) %v50_v1, 64  ;;  %v52_v5 = vld [vmem:[%s2011_s0 + $0x10] sm:$0xff]  ;;  %v69_v6 = vld [vmem:[%s2011_s0 + $0x98] sm:$0xff]  ;;  %v70_v8 = vld [vmem:[%s2011_s0 + $0xa0] sm:$0xff] }
   0xe   :  { %v53_v7 = vld [vmem:[%s2011_s0 + $0x18] sm:$0xff]  ;;  %v54_v9 = vld [vmem:[%s2011_s0 + $0x20] sm:$0xff]  ;;  %v71_v10 = vld [vmem:[%s2011_s0 + $0xa8] sm:$0xff] }
   0xf   :  { %v55_v11 = vld [vmem:[%s2011_s0 + $0x28] sm:$0xff]  ;;  %v72_v12 = vld [vmem:[%s2011_s0 + $0xb0] sm:$0xff]  ;;  %v73_v14 = vld [vmem:[%s2011_s0 + $0xb8] sm:$0xff] }
  0x10   :  { %v56_v13 = vld [vmem:[%s2011_s0 + $0x30] sm:$0xff]  ;;  %v57_v15 = vld [vmem:[%s2011_s0 + $0x38] sm:$0xff]  ;;  %v74_v16 = vld [vmem:[%s2011_s0 + $0xc0] sm:$0xff] }
  0x11   :  { %v58_v17 = vld [vmem:[%s2011_s0 + $0x40] sm:$0xff]  ;;  %v75_v18 = vld [vmem:[%s2011_s0 + $0xc8] sm:$0xff]  ;;  %v76_v20 = vld [vmem:[%s2011_s0 + $0xd0] sm:$0xff] }
  0x12   :  { %v59_v19 = vld [vmem:[%s2011_s0 + $0x48] sm:$0xff]  ;;  %v60_v21 = vld [vmem:[%s2011_s0 + $0x50] sm:$0xff]  ;;  %v77_v22 = vld [vmem:[%s2011_s0 + $0xd8] sm:$0xff] }
  0x13   :  { %v61_v23 = vld [vmem:[%s2011_s0 + $0x58] sm:$0xff]  ;;  %v191_v24 = vld [vmem:[%s2012_s1 + $0x168] sm:$0xff]  ;;  %v192_v25 = vld [vmem:[%s2012_s1 + $0x170] sm:$0xff] }
  0x14   :  { %115 = vxpose.xlu1.b32.cont [2/16] (narrow) %v67_v2, 64  ;;  %v193_v26 = vld [vmem:[%s2012_s1 + $0x178] sm:$0xff]  ;;  %202 = vmatpush.msra.mxu0 %v191_v24  ;;  %v188_v27 = vld [vmem:[%s2012_s1 + $0x150] sm:$0xff]  ;;  %v190_v29 = vld [vmem:[%s2012_s1 + $0x160] sm:$0xff] }
  0x15   :  { %83 = vxpose.xlu0.b32.cont [2/16] (narrow) %v51_v3, 64  ;;  %267 = vmatpush.msra.mxu1 %v192_v25  ;;  %v189_v28 = vld [vmem:[%s2012_s1 + $0x158] sm:$0xff]  ;;  %v186_v31 = vld [vmem:[%s2012_s1 + $0x140] sm:$0xff]  ;;  %v187_v32 = vld [vmem:[%s2012_s1 + $0x148] sm:$0xff] }
  0x16   :  { %332 = vmatpush.msra.mxu2 %v193_v26  ;;  %1213 = vmatpush.msra.mxu3 %v193_v26  ;;  %v185_v30 = vld [vmem:[%s2012_s1 + $0x138] sm:$0xff]  ;;  %v182_v33 = vld [vmem:[%s2012_s1 + $0x120] sm:$0xff]  ;;  %v183_v34 = vld [vmem:[%s2012_s1 + $0x128] sm:$0xff] }
  0x17   :  { %203 = vmatpush.msra.mxu0 %v188_v27  ;;  %268 = vmatpush.msra.mxu1 %v189_v28  ;;  %v78_v35 = vld [vmem:[%s2011_s0 + $0xe0] sm:$0xff]  ;;  %v184_v37 = vld [vmem:[%s2012_s1 + $0x130] sm:$0xff]  ;;  %v179_v38 = vld [vmem:[%s2012_s1 + $0x108] sm:$0xff] }
  0x18   :  { %333 = vmatpush.msra.mxu2 %v190_v29  ;;  %1214 = vmatpush.msra.mxu3 %v190_v29  ;;  %v62_v36 = vld [vmem:[%s2011_s0 + $0x60] sm:$0xff]  ;;  %v180_v39 = vld [vmem:[%s2012_s1 + $0x110] sm:$0xff]  ;;  %v181_v40 = vld [vmem:[%s2012_s1 + $0x118] sm:$0xff] }
  0x19   :  { %204 = vmatpush.msra.mxu0 %v185_v30  ;;  %269 = vmatpush.msra.mxu1 %v186_v31  ;;  %v176_v41 = vld [vmem:[%s2012_s1 + $0xf0] sm:$0xff]  ;;  %v177_v42 = vld [vmem:[%s2012_s1 + $0xf8] sm:$0xff]  ;;  %v178_v43 = vld [vmem:[%s2012_s1 + $0x100] sm:$0xff] }
  0x1a   :  { %334 = vmatpush.msra.mxu2 %v187_v32  ;;  %1215 = vmatpush.msra.mxu3 %v187_v32  ;;  %v173_v44 = vld [vmem:[%s2012_s1 + $0xd8] sm:$0xff]  ;;  %v174_v45 = vld [vmem:[%s2012_s1 + $0xe0] sm:$0xff]  ;;  %v175_v46 = vld [vmem:[%s2012_s1 + $0xe8] sm:$0xff] }
  0x1b   :  { %205 = vmatpush.msra.mxu0 %v182_v33  ;;  %270 = vmatpush.msra.mxu1 %v183_v34  ;;  %v79_v47 = vld [vmem:[%s2011_s0 + $0xe8] sm:$0xff]  ;;  %v170_v49 = vld [vmem:[%s2012_s1 + $0xc0] sm:$0xff]  ;;  %v172_v51 = vld [vmem:[%s2012_s1 + $0xd0] sm:$0xff] }
  0x1c   :  { %116 = vxpose.xlu1.b32.cont [3/16] (narrow) %v68_v4, 64  ;;  %335 = vmatpush.msra.mxu2 %v184_v37  ;;  %v63_v48 = vld [vmem:[%s2011_s0 + $0x68] sm:$0xff]  ;;  %v168_v53 = vld [vmem:[%s2012_s1 + $0xb0] sm:$0xff]  ;;  %v169_v54 = vld [vmem:[%s2012_s1 + $0xb8] sm:$0xff] }
  0x1d   :  { %84 = vxpose.xlu0.b32.cont [3/16] (narrow) %v52_v5, 64  ;;  %1216 = vmatpush.msra.mxu3 %v184_v37  ;;  %v171_v50 = vld [vmem:[%s2012_s1 + $0xc8] sm:$0xff]  ;;  %v164_v55 = vld [vmem:[%s2012_s1 + $0x90] sm:$0xff]  ;;  %v165_v56 = vld [vmem:[%s2012_s1 + $0x98] sm:$0xff] }
  0x1e   :  { %206 = vmatpush.msra.mxu0 %v179_v38  ;;  %271 = vmatpush.msra.mxu1 %v180_v39  ;;  %v167_v52 = vld [vmem:[%s2012_s1 + $0xa8] sm:$0xff]  ;;  %v166_v57 = vld [vmem:[%s2012_s1 + $0xa0] sm:$0xff]  ;;  %v161_v58 = vld [vmem:[%s2012_s1 + $0x78] sm:$0xff] }
  0x1f   :  { %336 = vmatpush.msra.mxu2 %v181_v40  ;;  %1217 = vmatpush.msra.mxu3 %v181_v40  ;;  %v162_v59 = vld [vmem:[%s2012_s1 + $0x80] sm:$0xff]  ;;  %v80_v60 = vld [vmem:[%s2011_s0 + $0xf0] sm:$0xff]  ;;  %v163_v62 = vld [vmem:[%s2012_s1 + $0x88] sm:$0xff] }
  0x20   :  { %207 = vmatpush.msra.mxu0 %v176_v41  ;;  %272 = vmatpush.msra.mxu1 %v177_v42  ;;  %v64_v61 = vld [vmem:[%s2011_s0 + $0x70] sm:$0xff]  ;;  %v158_v63 = vld [vmem:[%s2012_s1 + $0x60] sm:$0xff]  ;;  %v159_v0 = vld [vmem:[%s2012_s1 + $0x68] sm:$0xff] }
  0x21   :  { %337 = vmatpush.msra.mxu2 %v178_v43  ;;  %1218 = vmatpush.msra.mxu3 %v178_v43  ;;  %v160_v1 = vld [vmem:[%s2012_s1 + $0x70] sm:$0xff]  ;;  %v155_v2 = vld [vmem:[%s2012_s1 + $0x48] sm:$0xff]  ;;  %v157_v4 = vld [vmem:[%s2012_s1 + $0x58] sm:$0xff] }
  0x22   :  { %208 = vmatpush.msra.mxu0 %v173_v44  ;;  %273 = vmatpush.msra.mxu1 %v174_v45  ;;  %v156_v3 = vld [vmem:[%s2012_s1 + $0x50] sm:$0xff] }
  0x23   :  { %338 = vmatpush.msra.mxu2 %v175_v46  ;;  %1219 = vmatpush.msra.mxu3 %v175_v46  ;;  %v152_v5 = vld [vmem:[%s2012_s1 + $0x30] sm:$0xff] }
  0x24   :  { %117 = vxpose.xlu1.b32.cont [4/16] (narrow) %v69_v6, 64  ;;  %209 = vmatpush.msra.mxu0 %v170_v49  ;;  %v153_v6 = vld [vmem:[%s2012_s1 + $0x38] sm:$0xff] }
  0x25   :  { %85 = vxpose.xlu0.b32.cont [4/16] (narrow) %v53_v7, 64  ;;  %274 = vmatpush.msra.mxu1 %v171_v50  ;;  %v154_v7 = vld [vmem:[%s2012_s1 + $0x40] sm:$0xff] }
  0x26   :  { %339 = vmatpush.msra.mxu2 %v172_v51  ;;  %1220 = vmatpush.msra.mxu3 %v172_v51  ;;  %v194_v51 = vld [vmem:[%s2013_s2] sm:$0x7] }
  0x27   :  { %210 = vmatpush.msra.mxu0 %v167_v52  ;;  %275 = vmatpush.msra.mxu1 %v168_v53  ;;  %v1724_v53 = vperm.slane %v194_v51, 1 }
  0x28   :  { %340 = vmatpush.msra.mxu2 %v169_v54  ;;  %1221 = vmatpush.msra.mxu3 %v169_v54 }
  0x29   :  { %211 = vmatpush.msra.mxu0 %v164_v55  ;;  %276 = vmatpush.msra.mxu1 %v165_v56 }
  0x2a   :  { %341 = vmatpush.msra.mxu2 %v166_v57  ;;  %1222 = vmatpush.msra.mxu3 %v166_v57 }
  0x2b   :  { %212 = vmatpush.msra.mxu0 %v161_v58  ;;  %277 = vmatpush.msra.mxu1 %v162_v59  ;;  %v198_v59 = vperm.slane %v194_v51, 2 }
  0x2c   :  { %118 = vxpose.xlu1.b32.cont [5/16] (narrow) %v70_v8, 64  ;;  %342 = vmatpush.msra.mxu2 %v163_v62  ;;  %v81_v8 = vld [vmem:[%s2011_s0 + $0xf8] sm:$0xff] }
  0x2d   :  { %86 = vxpose.xlu0.b32.cont [5/16] (narrow) %v54_v9, 64  ;;  %1223 = vmatpush.msra.mxu3 %v163_v62  ;;  %v65_v9 = vld [vmem:[%s2011_s0 + $0x78] sm:$0xff] }
  0x2e   :  { %213 = vmatpush.msra.mxu0 %v158_v63  ;;  %278 = vmatpush.msra.mxu1 %v159_v0 }
  0x2f   :  { %343 = vmatpush.msra.mxu2 %v160_v1  ;;  %1224 = vmatpush.msra.mxu3 %v160_v1 }
  0x30   :  { %214 = vmatpush.msra.mxu0 %v155_v2  ;;  %279 = vmatpush.msra.mxu1 %v156_v3 }
  0x31   :  { %344 = vmatpush.msra.mxu2 %v157_v4  ;;  %1225 = vmatpush.msra.mxu3 %v157_v4 }
  0x32   :  { %215 = vmatpush.msra.mxu0 %v152_v5  ;;  %280 = vmatpush.msra.mxu1 %v153_v6 }
  0x33   :  { %345 = vmatpush.msra.mxu2 %v154_v7  ;;  %1226 = vmatpush.msra.mxu3 %v154_v7 }
  0x34   :  { %119 = vxpose.xlu1.b32.cont [6/16] (narrow) %v71_v10, 64  ;;  %v149_v10 = vld [vmem:[%s2012_s1 + $0x18] sm:$0xff] }
  0x35   :  { %87 = vxpose.xlu0.b32.cont [6/16] (narrow) %v55_v11, 64  ;;  %v150_v11 = vld [vmem:[%s2012_s1 + $0x20] sm:$0xff]  ;;  %216 = vmatpush.msra.mxu0 %v149_v10 }
  0x36   :  { %281 = vmatpush.msra.mxu1 %v150_v11 }
  0x3c   :  { %120 = vxpose.xlu1.b32.cont [7/16] (narrow) %v72_v12, 64  ;;  %v151_v12 = vld [vmem:[%s2012_s1 + $0x28] sm:$0xff] }
  0x3d   :  { %88 = vxpose.xlu0.b32.cont [7/16] (narrow) %v56_v13, 64  ;;  %v146_v13 = vld [vmem:[%s2012_s1] sm:$0xff]  ;;  %346 = vmatpush.msra.mxu2 %v151_v12 }
  0x3e   :  { %1227 = vmatpush.msra.mxu3 %v151_v12  ;;  %217 = vmatpush.msra.mxu0 %v146_v13 }
  0x44   :  { %121 = vxpose.xlu1.b32.cont [8/16] (narrow) %v73_v14, 64  ;;  %v147_v14 = vld [vmem:[%s2012_s1 + $0x8] sm:$0xff] }
  0x45   :  { %89 = vxpose.xlu0.b32.cont [8/16] (narrow) %v57_v15, 64  ;;  %v148_v15 = vld [vmem:[%s2012_s1 + $0x10] sm:$0xff]  ;;  %282 = vmatpush.msra.mxu1 %v147_v14 }
  0x46   :  { %347 = vmatpush.msra.mxu2 %v148_v15  ;;  %1228 = vmatpush.msra.mxu3 %v148_v15 }
  0x4c   :  { %122 = vxpose.xlu1.b32.cont [9/16] (narrow) %v74_v16, 64 }
  0x4d   :  { %90 = vxpose.xlu0.b32.cont [9/16] (narrow) %v58_v17, 64 }
  0x54   :  { %123 = vxpose.xlu1.b32.cont [10/16] (narrow) %v75_v18, 64 }
  0x55   :  { %91 = vxpose.xlu0.b32.cont [10/16] (narrow) %v59_v19, 64 }
  0x5c   :  { %124 = vxpose.xlu1.b32.cont [11/16] (narrow) %v76_v20, 64 }
  0x5d   :  { %92 = vxpose.xlu0.b32.cont [11/16] (narrow) %v60_v21, 64 }
  0x64   :  { %125 = vxpose.xlu1.b32.cont [12/16] (narrow) %v77_v22, 64 }
  0x65   :  { %93 = vxpose.xlu0.b32.cont [12/16] (narrow) %v61_v23, 64 }
  0x6c   :  { %126 = vxpose.xlu1.b32.cont [13/16] (narrow) %v78_v35, 64 }
  0x6d   :  { %94 = vxpose.xlu0.b32.cont [13/16] (narrow) %v62_v36, 64 }
  0x74   :  { %127 = vxpose.xlu1.b32.cont [14/16] (narrow) %v79_v47, 64 }
  0x75   :  { %95 = vxpose.xlu0.b32.cont [14/16] (narrow) %v63_v48, 64 }
  0x7c   :  { %128 = vxpose.xlu1.b32.cont [15/16] (narrow) %v80_v60, 64 }
  0x7d   :  { %96 = vxpose.xlu0.b32.cont [15/16] (narrow) %v64_v61, 64 }
  0x84   :  { %129 = vxpose.xlu1.b32.end [16/16] (narrow) %v81_v8, 64 }
  0x85   :  { %97 = vxpose.xlu0.b32.end [16/16] (narrow) %v65_v9, 64 }
  0xb0   :  { %v1631_v16 = vpop.trf.xlu1 }
  0xb1   :  { %v1633_v17 = vpop.trf.xlu0  ;;  %372 = vmatmul.f32.vlgmr.msra.gmra.mxu3 %v1631_v16 }
  0xb2   :  { %218 = vmatmul.f32.vlgmr.msra.gmra.mxu0 %v1633_v17  ;;  %283 = vmatmul.f32.vlgmr.msra.gmra.mxu1 %v1633_v17 }
  0xb3   :  { %348 = vmatmul.f32.vlgmr.msra.gmra.mxu2 %v1633_v17 }
  0xb8   :  { %v1639_v18 = vpop.trf.xlu1 }
  0xb9   :  { %v1641_v19 = vpop.trf.xlu0  ;;  %375 = vmatmul.f32.gmra.mxu3 %v1639_v18 }
  0xba   :  { %221 = vmatmul.f32.gmra.mxu0 %v1641_v19  ;;  %286 = vmatmul.f32.gmra.mxu1 %v1641_v19 }
  0xbb   :  { %351 = vmatmul.f32.gmra.mxu2 %v1641_v19 }
  0xc0   :  { %v1647_v20 = vpop.trf.xlu1 }
  0xc1   :  { %v1649_v21 = vpop.trf.xlu0  ;;  %378 = vmatmul.f32.gmra.mxu3 %v1647_v20 }
  0xc2   :  { %224 = vmatmul.f32.gmra.mxu0 %v1649_v21  ;;  %289 = vmatmul.f32.gmra.mxu1 %v1649_v21 }
  0xc3   :  { %354 = vmatmul.f32.gmra.mxu2 %v1649_v21 }
  0xc8   :  { %v1655_v22 = vpop.trf.xlu1 }
  0xc9   :  { %v1657_v23 = vpop.trf.xlu0  ;;  %381 = vmatmul.f32.gmra.mxu3 %v1655_v22 }
  0xca   :  { %227 = vmatmul.f32.gmra.mxu0 %v1657_v23  ;;  %292 = vmatmul.f32.gmra.mxu1 %v1657_v23 }
  0xcb   :  { %357 = vmatmul.f32.gmra.mxu2 %v1657_v23 }
  0xd0   :  { %v1663_v24 = vpop.trf.xlu1 }
  0xd1   :  { %v1665_v25 = vpop.trf.xlu0  ;;  %384 = vmatmul.f32.gmra.mxu3 %v1663_v24 }
  0xd2   :  { %230 = vmatmul.f32.gmra.mxu0 %v1665_v25  ;;  %295 = vmatmul.f32.gmra.mxu1 %v1665_v25 }
  0xd3   :  { %360 = vmatmul.f32.gmra.mxu2 %v1665_v25 }
  0xd8   :  { %v1671_v26 = vpop.trf.xlu1 }
  0xd9   :  { %v1673_v27 = vpop.trf.xlu0  ;;  %387 = vmatmul.f32.gmra.mxu3 %v1671_v26 }
  0xda   :  { %233 = vmatmul.f32.gmra.mxu0 %v1673_v27  ;;  %298 = vmatmul.f32.gmra.mxu1 %v1673_v27 }
  0xdb   :  { %363 = vmatmul.f32.gmra.mxu2 %v1673_v27 }
  0xe0   :  { %v1679_v28 = vpop.trf.xlu1 }
  0xe1   :  { %v1681_v29 = vpop.trf.xlu0  ;;  %390 = vmatmul.f32.gmra.mxu3 %v1679_v28 }
  0xe2   :  { %236 = vmatmul.f32.gmra.mxu0 %v1681_v29  ;;  %301 = vmatmul.f32.gmra.mxu1 %v1681_v29 }
  0xe3   :  { %366 = vmatmul.f32.gmra.mxu2 %v1681_v29 }
  0xe8   :  { %v1687_v30 = vpop.trf.xlu1 }
  0xe9   :  { %v1689_v31 = vpop.trf.xlu0  ;;  %393 = vmatmul.f32.gmra.mxu3 %v1687_v30 }
  0xea   :  { %239 = vmatmul.f32.gmra.mxu0 %v1689_v31  ;;  %304 = vmatmul.f32.gmra.mxu1 %v1689_v31 }
  0xeb   :  { %369 = vmatmul.f32.gmra.mxu2 %v1689_v31 }
  0xf2   :  { %242 = vmatmul.f32.gmra.mxu0 %v1631_v16  ;;  %307 = vmatmul.f32.gmra.mxu1 %v1631_v16 }
  0xfa   :  { %245 = vmatmul.f32.gmra.mxu0 %v1639_v18  ;;  %310 = vmatmul.f32.gmra.mxu1 %v1639_v18 }
 0x102   :  { %248 = vmatmul.f32.gmra.mxu0 %v1647_v20  ;;  %313 = vmatmul.f32.gmra.mxu1 %v1647_v20 }
 0x10a   :  { %251 = vmatmul.f32.gmra.mxu0 %v1655_v22  ;;  %316 = vmatmul.f32.gmra.mxu1 %v1655_v22 }
 0x112   :  { %254 = vmatmul.f32.gmra.mxu0 %v1663_v24  ;;  %319 = vmatmul.f32.gmra.mxu1 %v1663_v24 }
 0x11a   :  { %257 = vmatmul.f32.gmra.mxu0 %v1671_v26  ;;  %322 = vmatmul.f32.gmra.mxu1 %v1671_v26 }
 0x122   :  { %260 = vmatmul.f32.gmra.mxu0 %v1679_v28  ;;  %325 = vmatmul.f32.gmra.mxu1 %v1679_v28 }
 0x12a   :  { %263 = vmatmul.f32.gmra.mxu0 %v1687_v30  ;;  %328 = vmatmul.f32.gmra.mxu1 %v1687_v30 }
 0x12f   :  { %v1711_v32 = vpop.f32.mrf.mxu1  ;;  %v1722_v52 = vpop.f32.mrf.mxu0 }
 0x134   :  { %v1715_v34 = vpop.f32.mrf.mxu3 }
 0x136   :  { %v1713_v33 = vpop.f32.mrf.mxu2 }
 0x137   :  { %v1717_v35 = vpop.f32.mrf.mxu1  ;;  %v222_v2 = vpop.f32.mrf.mxu0 }
 0x13c   :  { %v376_v37 = vpop.f32.mrf.mxu3 }
 0x13d   :  { %v377_v15 = vadd.f32 %v376_v37, %v198_v59 }
 0x13e   :  { %v352_v36 = vpop.f32.mrf.mxu2 }
 0x13f   :  { %v290_v38 = vpop.f32.mrf.mxu1 }
 0x144   :  { %v379_v40 = vpop.f32.mrf.mxu3 }
 0x145   :  { %v380_v11 = vadd.f32 %v379_v40, %v198_v59  ;;  %v350_v40 = vadd.f32 %v1713_v33, %v198_v59 }
 0x146   :  { %v355_v39 = vpop.f32.mrf.mxu2 }
 0x147   :  { %v293_v41 = vpop.f32.mrf.mxu1 }
 0x148   :  { %v294_v14 = vadd.f32 %v293_v41, %v1724_v53  ;;  %v1740_v41 = vperm.slane %v194_v51, 0 }
 0x14a   :  { %v220_v33 = vadd.f32 %v1722_v52, %v1740_v41 }
 0x14c   :  { %v382_v43 = vpop.f32.mrf.mxu3 }
 0x14d   :  { %v383_v9 = vadd.f32 %v382_v43, %v198_v59  ;;  %v291_v43 = vadd.f32 %v290_v38, %v1724_v53 }
 0x14e   :  { %v358_v42 = vpop.f32.mrf.mxu2 }
 0x14f   :  { %v296_v44 = vpop.f32.mrf.mxu1  ;;  %v359_v12 = vadd.f32 %v358_v42, %v198_v59  ;;  %v374_v42 = vadd.f32 %v1715_v34, %v198_v59 }
 0x150   :  { %v297_v8 = vadd.f32 %v296_v44, %v1724_v53  ;;  %v353_v44 = vadd.f32 %v352_v36, %v198_v59  ;;  %v285_v36 = vadd.f32 %v1711_v32, %v1724_v53 }
 0x154   :  { %v385_v46 = vpop.f32.mrf.mxu3 }
 0x155   :  { %v386_v6 = vadd.f32 %v385_v46, %v198_v59  ;;  %v356_v46 = vadd.f32 %v355_v39, %v198_v59  ;;  %v288_v39 = vadd.f32 %v1717_v35, %v1724_v53 }
 0x156   :  { %v361_v45 = vpop.f32.mrf.mxu2 }
 0x157   :  { %v299_v47 = vpop.f32.mrf.mxu1  ;;  %v362_v10 = vadd.f32 %v361_v45, %v198_v59 }
 0x158   :  { %v300_v3 = vadd.f32 %v299_v47, %v1724_v53  ;;  %v225_v47 = vpop.f32.mrf.mxu0 }
 0x159   :  { %v226_v35 = vadd.f32 %v225_v47, %v1740_v41 }
 0x15c   :  { %v388_v49 = vpop.f32.mrf.mxu3 }
 0x15d   :  { %v389_v4 = vadd.f32 %v388_v49, %v198_v59 }
 0x15e   :  { %v364_v48 = vpop.f32.mrf.mxu2 }
 0x15f   :  { %v302_v50 = vpop.f32.mrf.mxu1  ;;  %v365_v7 = vadd.f32 %v364_v48, %v198_v59  ;;  %v223_v48 = vadd.f32 %v222_v2, %v1740_v41 }
 0x160   :  { %v303_v58 = vadd.f32 %v302_v50, %v1724_v53  ;;  %v228_v38 = vpop.f32.mrf.mxu0 }
 0x164   :  { %v391_v55 = vpop.f32.mrf.mxu3 }
 0x165   :  { %v392_v62 = vadd.f32 %v391_v55, %v198_v59 }
 0x166   :  { %v367_v54 = vpop.f32.mrf.mxu2 }
 0x167   :  { %v305_v56 = vpop.f32.mrf.mxu1  ;;  %v368_v5 = vadd.f32 %v367_v54, %v198_v59  ;;  %v229_v54 = vadd.f32 %v228_v38, %v1740_v41 }
 0x168   :  { %v306_v57 = vadd.f32 %v305_v56, %v1724_v53  ;;  %v231_v45 = vpop.f32.mrf.mxu0 }
 0x169   :  { %v232_v56 = vadd.f32 %v231_v45, %v1740_v41 }
 0x16a   :  { %405 = vmatpush.xpose.msrb.mxu3 %v306_v57 }
 0x16c   :  { %v394_v61 = vpop.f32.mrf.mxu3 }
 0x16d   :  { %v395_v0 = vadd.f32 %v394_v61, %v198_v59 }
 0x16e   :  { %v370_v60 = vpop.f32.mrf.mxu2  ;;  %406 = vmatpush.xpose.msrb.mxu3 %v303_v58 }
 0x16f   :  { %v371_v63 = vadd.f32 %v370_v60, %v198_v59  ;;  %v1728_v1 = vpop.f32.mrf.mxu1  ;;  %945 = vmatpush.msrb.mxu1 %v395_v0 }
 0x170   :  { %v234_v51 = vpop.f32.mrf.mxu0 }
 0x171   :  { %880 = vmatpush.msrb.mxu0 %v371_v63  ;;  %946 = vmatpush.msrb.mxu1 %v392_v62  ;;  %v235_v60 = vadd.f32 %v234_v51, %v1740_v41 }
 0x172   :  { %407 = vmatpush.xpose.msrb.mxu3 %v300_v3 }
 0x173   :  { %881 = vmatpush.msrb.mxu0 %v368_v5  ;;  %947 = vmatpush.msrb.mxu1 %v389_v4 }
 0x175   :  { %882 = vmatpush.msrb.mxu0 %v365_v7  ;;  %948 = vmatpush.msrb.mxu1 %v386_v6  ;;  %v309_v7 = vadd.f32 %v1728_v1, %v1724_v53 }
 0x176   :  { %408 = vmatpush.xpose.msrb.mxu3 %v297_v8 }
 0x177   :  { %883 = vmatpush.msrb.mxu0 %v362_v10  ;;  %v1732_v13 = vpop.f32.mrf.mxu1  ;;  %949 = vmatpush.msrb.mxu1 %v383_v9 }
 0x178   :  { %v237_v55 = vpop.f32.mrf.mxu0  ;;  %v312_v6 = vadd.f32 %v1732_v13, %v1724_v53 }
 0x179   :  { %884 = vmatpush.msrb.mxu0 %v359_v12  ;;  %950 = vmatpush.msrb.mxu1 %v380_v11  ;;  %v238_v0 = vadd.f32 %v237_v55, %v1740_v41 }
 0x17a   :  { %409 = vmatpush.xpose.msrb.mxu3 %v294_v14 }
 0x17b   :  { %885 = vmatpush.msrb.mxu0 %v356_v46  ;;  %951 = vmatpush.msrb.mxu1 %v377_v15 }
 0x17d   :  { %886 = vmatpush.msrb.mxu0 %v353_v44  ;;  %952 = vmatpush.msrb.mxu1 %v374_v42 }
 0x17e   :  { %410 = vmatpush.xpose.msrb.mxu3 %v291_v43 }
 0x17f   :  { %887 = vmatpush.msrb.mxu0 %v350_v40  ;;  %v314_v37 = vpop.f32.mrf.mxu1 }
 0x180   :  { %v240_v58 = vpop.f32.mrf.mxu0  ;;  %v315_v3 = vadd.f32 %v314_v37, %v1724_v53 }
 0x181   :  { %v241_v4 = vadd.f32 %v240_v58, %v1740_v41 }
 0x182   :  { %411 = vmatpush.xpose.msrb.mxu3 %v288_v39 }
 0x186   :  { %412 = vmatpush.xpose.msrb.mxu3 %v285_v36 }
 0x187   :  { %v317_v34 = vpop.f32.mrf.mxu1 }
 0x188   :  { %v243_v63 = vpop.f32.mrf.mxu0  ;;  %v318_v2 = vadd.f32 %v317_v34, %v1724_v53 }
 0x189   :  { %413 = vmatmul.f32.vlgmr.msrb.gmra.mxu3 %v220_v33  ;;  %v244_v8 = vadd.f32 %v243_v63, %v1740_v41 }
 0x18f   :  { %v320_v49 = vpop.f32.mrf.mxu1 }
 0x190   :  { %v321_v62 = vadd.f32 %v320_v49, %v1724_v53  ;;  %v246_v5 = vpop.f32.mrf.mxu0 }
 0x191   :  { %416 = vmatmul.f32.gmra.mxu3 %v223_v48  ;;  %v247_v10 = vadd.f32 %v246_v5, %v1740_v41 }
 0x197   :  { %v323_v50 = vpop.f32.mrf.mxu1 }
 0x198   :  { %v324_v61 = vadd.f32 %v323_v50, %v1724_v53  ;;  %v249_v9 = vpop.f32.mrf.mxu0 }
 0x199   :  { %419 = vmatmul.f32.gmra.mxu3 %v226_v35  ;;  %v250_v12 = vadd.f32 %v249_v9, %v1740_v41 }
 0x19f   :  { %v326_v32 = vpop.f32.mrf.mxu1 }
 0x1a0   :  { %v327_v59 = vadd.f32 %v326_v32, %v1724_v53  ;;  %v252_v11 = vpop.f32.mrf.mxu0 }
 0x1a1   :  { %422 = vmatmul.f32.gmra.mxu3 %v229_v54  ;;  %v253_v13 = vadd.f32 %v252_v11, %v1740_v41 }
 0x1a7   :  { %v329_v52 = vpop.f32.mrf.mxu1 }
 0x1a8   :  { %v330_v57 = vadd.f32 %v329_v52, %v1724_v53  ;;  %v255_v14 = vpop.f32.mrf.mxu0 }
 0x1a9   :  { %425 = vmatmul.f32.gmra.mxu3 %v232_v56  ;;  %v256_v15 = vadd.f32 %v255_v14, %v1740_v41 }
 0x1aa   :  { %446 = vmatpush.xpose.msra.mxu3 %v330_v57 }
 0x1ae   :  { %447 = vmatpush.xpose.msra.mxu3 %v327_v59 }
 0x1b0   :  { %v258_v46 = vpop.f32.mrf.mxu0 }
 0x1b1   :  { %428 = vmatmul.f32.gmra.mxu3 %v235_v60  ;;  %v259_v53 = vadd.f32 %v258_v46, %v1740_v41 }
 0x1b2   :  { %448 = vmatpush.xpose.msra.mxu3 %v324_v61 }
 0x1b6   :  { %449 = vmatpush.xpose.msra.mxu3 %v321_v62 }
 0x1b8   :  { %v261_v1 = vpop.f32.mrf.mxu0 }
 0x1b9   :  { %431 = vmatmul.f32.gmra.mxu3 %v238_v0  ;;  %v262_v47 = vadd.f32 %v261_v1, %v1740_v41 }
 0x1ba   :  { %450 = vmatpush.xpose.msra.mxu3 %v318_v2 }
 0x1be   :  { %451 = vmatpush.xpose.msra.mxu3 %v315_v3 }
 0x1c0   :  { %v264_v44 = vpop.f32.mrf.mxu0 }
 0x1c1   :  { %434 = vmatmul.f32.gmra.mxu3 %v241_v4  ;;  %v265_v43 = vadd.f32 %v264_v44, %v1740_v41 }
 0x1c2   :  { %452 = vmatpush.xpose.msra.mxu3 %v312_v6 }
 0x1c6   :  { %453 = vmatpush.xpose.msra.mxu3 %v309_v7 }
 0x1c9   :  { %454 = vmatmul.f32.vlgmr.msra.gmra.mxu3 %v244_v8 }
 0x1d1   :  { %457 = vmatmul.f32.gmra.mxu3 %v247_v10 }
 0x1d9   :  { %460 = vmatmul.f32.gmra.mxu3 %v250_v12 }
 0x1e1   :  { %463 = vmatmul.f32.gmra.mxu3 %v253_v13 }
 0x1e9   :  { %466 = vmatmul.f32.gmra.mxu3 %v256_v15 }
 0x1f1   :  { %469 = vmatmul.f32.gmra.mxu3 %v259_v53 }
 0x1f9   :  { %472 = vmatmul.f32.gmra.mxu3 %v262_v47 }
 0x201   :  { %475 = vmatmul.f32.gmra.mxu3 %v265_v43 }
 0x20c   :  { %v414_v40 = vpop.f32.mrf.mxu3 }
 0x20d   :  { %v480_v42 = vsel %vm479_vm0, %v414_v40, -inf }
 0x20e   :  { %481 = vmax.xlane.f32.xlu2 %v480_v42 }
 0x214   :  { %v417_v37 = vpop.f32.mrf.mxu3 }
 0x215   :  { %v483_v39 = vsel %vm479_vm0, %v417_v37, -inf }
 0x216   :  { %484 = vmax.xlane.f32.xlu2 %v483_v39 }
 0x21c   :  { %v420_v36 = vpop.f32.mrf.mxu3 }
 0x21d   :  { %v486_v38 = vsel %vm479_vm0, %v420_v36, -inf }
 0x21e   :  { %487 = vmax.xlane.f32.xlu2 %v486_v38 }
 0x224   :  { %v423_v33 = vpop.f32.mrf.mxu3 }
 0x225   :  { %v489_v34 = vsel %vm479_vm0, %v423_v33, -inf }
 0x226   :  { %490 = vmax.xlane.f32.xlu2 %v489_v34 }
 0x22c   :  { %v1775_v45 = vpop.f32.mrf.mxu3 }
 0x22d   :  { %v492_v41 = vsel %vm479_vm0, %v1775_v45, -inf }
 0x22e   :  { %493 = vmax.xlane.f32.xlu2 %v492_v41 }
 0x234   :  { %v1779_v48 = vpop.f32.mrf.mxu3 }
 0x235   :  { %v495_v49 = vsel %vm479_vm0, %v1779_v48, -inf }
 0x236   :  { %496 = vmax.xlane.f32.xlu2 %v495_v49 }
 0x23c   :  { %v1783_v35 = vpop.f32.mrf.mxu3 }
 0x23d   :  { %v498_v50 = vsel %vm479_vm0, %v1783_v35, -inf }
 0x23e   :  { %499 = vmax.xlane.f32.xlu2 %v498_v50 }
 0x244   :  { %v1787_v51 = vpop.f32.mrf.mxu3 }
 0x245   :  { %v501_v54 = vsel %vm479_vm0, %v1787_v51, -inf }
 0x246   :  { %502 = vmax.xlane.f32.xlu2 %v501_v54 }
 0x24c   :  { %v1791_v32 = vpop.f32.mrf.mxu3 }
 0x24d   :  { %v504_v55 = vsel %vm479_vm0, %v1791_v32, -inf }
 0x24e   :  { %505 = vmax.xlane.f32.xlu2 %v504_v55 }
 0x254   :  { %v1795_v56 = vpop.f32.mrf.mxu3 }
 0x255   :  { %v507_v52 = vsel %vm479_vm0, %v1795_v56, -inf }
 0x256   :  { %508 = vmax.xlane.f32.xlu2 %v507_v52 }
 0x25c   :  { %v1799_v57 = vpop.f32.mrf.mxu3 }
 0x25d   :  { %v510_v58 = vsel %vm479_vm0, %v1799_v57, -inf }
 0x25e   :  { %511 = vmax.xlane.f32.xlu2 %v510_v58 }
 0x264   :  { %v1803_v59 = vpop.f32.mrf.mxu3 }
 0x265   :  { %v513_v60 = vsel %vm479_vm0, %v1803_v59, -inf }
 0x266   :  { %514 = vmax.xlane.f32.xlu2 %v513_v60 }
 0x26c   :  { %v1807_v61 = vpop.f32.mrf.mxu3 }
 0x26d   :  { %v516_v62 = vsel %vm479_vm0, %v1807_v61, -inf }
 0x26e   :  { %517 = vmax.xlane.f32.xlu2 %v516_v62 }
 0x274   :  { %v1811_v63 = vpop.f32.mrf.mxu3 }
 0x275   :  { %v519_v0 = vsel %vm479_vm0, %v1811_v63, -inf }
 0x276   :  { %520 = vmax.xlane.f32.xlu2 %v519_v0 }
 0x27c   :  { %v1815_v2 = vpop.f32.mrf.mxu3 }
 0x27d   :  { %v522_v3 = vsel %vm479_vm0, %v1815_v2, -inf }
 0x27e   :  { %523 = vmax.xlane.f32.xlu2 %v522_v3 }
 0x281   :  { %v482_v4 = vpop.xlane.xlu2 %481 }
 0x282   :  { %v528_v5 = vsub.f32 %v414_v40, %v482_v4 }
 0x284   :  { %v544_v6 = vmul.f32 1.442695, %v528_v5  ;;  %v1819_v7 = vpop.f32.mrf.mxu3 }
 0x285   :  { %v525_v8 = vsel %vm479_vm0, %v1819_v7, -inf }
 0x286   :  { %1235 = vpow2.f32 %v544_v6  ;;  %526 = vmax.xlane.f32.xlu2 %v525_v8 }
 0x289   :  { %v485_v9 = vpop.xlane.xlu2 %484 }
 0x28a   :  { %v529_v10 = vsub.f32 %v417_v37, %v485_v9 }
 0x28c   :  { %v1236_v11 = vpop.eup %1235  ;;  %v546_v12 = vmul.f32 1.442695, %v529_v10 }
 0x28d   :  { %1197 = vmatmul.msk.f32.vlgmr.msrb.gmra.mxu0 %vm479_vm0, %v1236_v11  ;;  %v576_v14 = vsel %vm479_vm0, %v1236_v11, 0.0 }
 0x28e   :  { %1237 = vpow2.f32 %v546_v12  ;;  %577 = vadd.xlane.f32.xlu0 %v576_v14 }
 0x291   :  { %v488_v13 = vpop.xlane.xlu2 %487 }
 0x292   :  { %v530_v15 = vsub.f32 %v420_v36, %v488_v13 }
 0x294   :  { %v1238_v46 = vpop.eup %1237  ;;  %v548_v53 = vmul.f32 1.442695, %v530_v15 }
 0x295   :  { %1198 = vmatmul.msk.f32.gmra.mxu0 %vm479_vm0, %v1238_v46  ;;  %v579_v1 = vsel %vm479_vm0, %v1238_v46, 0.0 }
 0x296   :  { %1239 = vpow2.f32 %v548_v53  ;;  %580 = vadd.xlane.f32.xlu1 %v579_v1  ;;  %v1008_v1 = vld [vmem:[#allocation2 + $0x70] sm:$0xff] }
 0x299   :  { %v491_v47 = vpop.xlane.xlu2 %490 }
 0x29a   :  { %v531_v44 = vsub.f32 %v423_v33, %v491_v47 }
 0x29c   :  { %v1240_v43 = vpop.eup %1239  ;;  %v550_v40 = vmul.f32 1.442695, %v531_v44 }
 0x29d   :  { %1199 = vmatmul.msk.f32.gmra.mxu0 %vm479_vm0, %v1240_v43  ;;  %v582_v42 = vsel %vm479_vm0, %v1240_v43, 0.0  ;;  %v1007_v43 = vld [vmem:[#allocation2 + $0x68] sm:$0xff] }
 0x29e   :  { %1241 = vpow2.f32 %v550_v40  ;;  %583 = vadd.xlane.f32.xlu2 %v582_v42 }
 0x2a1   :  { %v494_v37 = vpop.xlane.xlu2 %493 }
 0x2a2   :  { %v532_v39 = vsub.f32 %v1775_v45, %v494_v37 }
 0x2a4   :  { %v1242_v36 = vpop.eup %1241  ;;  %v552_v38 = vmul.f32 1.442695, %v532_v39  ;;  %v1005_v39 = vld [vmem:[#allocation2 + $0x58] sm:$0xff] }
 0x2a5   :  { %1200 = vmatmul.msk.f32.gmra.mxu0 %vm479_vm0, %v1242_v36  ;;  %v585_v34 = vsel %vm479_vm0, %v1242_v36, 0.0  ;;  %v1004_v36 = vld [vmem:[#allocation2 + $0x50] sm:$0xff] }
 0x2a6   :  { %1243 = vpow2.f32 %v552_v38  ;;  %586 = vadd.xlane.f32.xlu2 %v585_v34 }
 0x2a9   :  { %v497_v33 = vpop.xlane.xlu2 %496 }
 0x2aa   :  { %v533_v41 = vsub.f32 %v1779_v48, %v497_v33 }
 0x2ac   :  { %v1244_v49 = vpop.eup %1243  ;;  %v554_v50 = vmul.f32 1.442695, %v533_v41 }
 0x2ad   :  { %1201 = vmatmul.msk.f32.gmra.mxu0 %vm479_vm0, %v1244_v49  ;;  %v588_v54 = vsel %vm479_vm0, %v1244_v49, 0.0  ;;  %v1002_v49 = vld [vmem:[#allocation2 + $0x40] sm:$0xff] }
 0x2ae   :  { %1245 = vpow2.f32 %v554_v50  ;;  %589 = vadd.xlane.f32.xlu2 %v588_v54  ;;  %v1001_v54 = vld [vmem:[#allocation2 + $0x38] sm:$0xff] }
 0x2b1   :  { %v500_v45 = vpop.xlane.xlu2 %499 }
 0x2b2   :  { %v534_v55 = vsub.f32 %v1783_v35, %v500_v45  ;;  %v1000_v45 = vld [vmem:[#allocation2 + $0x30] sm:$0xff] }
 0x2b4   :  { %v1246_v52 = vpop.eup %1245  ;;  %v556_v58 = vmul.f32 1.442695, %v534_v55 }
 0x2b5   :  { %1202 = vmatmul.msk.f32.gmra.mxu0 %vm479_vm0, %v1246_v52  ;;  %v591_v60 = vsel %vm479_vm0, %v1246_v52, 0.0 }
 0x2b6   :  { %1247 = vpow2.f32 %v556_v58  ;;  %592 = vadd.xlane.f32.xlu2 %v591_v60 }
 0x2b9   :  { %v503_v48 = vpop.xlane.xlu2 %502 }
 0x2ba   :  { %v535_v62 = vsub.f32 %v1787_v51, %v503_v48  ;;  %v998_v48 = vld [vmem:[#allocation2 + $0x20] sm:$0xff] }
 0x2bc   :  { %v1248_v0 = vpop.eup %1247  ;;  %v558_v3 = vmul.f32 1.442695, %v535_v62 }
 0x2bd   :  { %1203 = vmatmul.msk.f32.gmra.mxu0 %vm479_vm0, %v1248_v0  ;;  %v594_v4 = vsel %vm479_vm0, %v1248_v0, 0.0  ;;  %v997_v0 = vld [vmem:[#allocation2 + $0x18] sm:$0xff] }
 0x2be   :  { %1249 = vpow2.f32 %v558_v3  ;;  %595 = vadd.xlane.f32.xlu2 %v594_v4  ;;  %v996_v3 = vld [vmem:[#allocation2 + $0x10] sm:$0xff] }
 0x2c1   :  { %v506_v35 = vpop.xlane.xlu2 %505 }
 0x2c2   :  { %v536_v5 = vsub.f32 %v1791_v32, %v506_v35 }
 0x2c4   :  { %v1250_v6 = vpop.eup %1249  ;;  %v560_v8 = vmul.f32 1.442695, %v536_v5 }
 0x2c5   :  { %1204 = vmatmul.msk.f32.gmra.mxu0 %vm479_vm0, %v1250_v6  ;;  %v597_v9 = vsel %vm479_vm0, %v1250_v6, 0.0 }
 0x2c6   :  { %1251 = vpow2.f32 %v560_v8  ;;  %598 = vadd.xlane.f32.xlu2 %v597_v9  ;;  %v994_v8 = vld [vmem:[#allocation2] sm:$0xff] }
 0x2c9   :  { %v509_v51 = vpop.xlane.xlu2 %508 }
 0x2ca   :  { %v537_v10 = vsub.f32 %v1795_v56, %v509_v51  ;;  %v1009_v56 = vld [vmem:[#allocation2 + $0x78] sm:$0xff] }
 0x2cb   :  { %1014 = vmatpush.msrb.mxu2 %v1009_v56 }
 0x2cc   :  { %v1252_v11 = vpop.eup %1251  ;;  %v562_v12 = vmul.f32 1.442695, %v537_v10 }
 0x2cd   :  { %1205 = vmatmul.msk.f32.vlgmr.msrb.gmra.mxu1 %vm479_vm0, %v1252_v11  ;;  %v600_v14 = vsel %vm479_vm0, %v1252_v11, 0.0  ;;  %1015 = vmatpush.msrb.mxu2 %v1008_v1 }
 0x2ce   :  { %1253 = vpow2.f32 %v562_v12  ;;  %601 = vadd.xlane.f32.xlu2 %v600_v14 }
 0x2cf   :  { %1016 = vmatpush.msrb.mxu2 %v1007_v43 }
 0x2d1   :  { %v512_v32 = vpop.xlane.xlu2 %511 }
 0x2d2   :  { %v538_v13 = vsub.f32 %v1799_v57, %v512_v32  ;;  %v1006_v57 = vld [vmem:[#allocation2 + $0x60] sm:$0xff] }
 0x2d3   :  { %1017 = vmatpush.msrb.mxu2 %v1006_v57 }
 0x2d4   :  { %v1254_v15 = vpop.eup %1253  ;;  %v564_v46 = vmul.f32 1.442695, %v538_v13 }
 0x2d5   :  { %1206 = vmatmul.msk.f32.gmra.mxu1 %vm479_vm0, %v1254_v15  ;;  %v603_v53 = vsel %vm479_vm0, %v1254_v15, 0.0  ;;  %1018 = vmatpush.msrb.mxu2 %v1005_v39 }
 0x2d6   :  { %1255 = vpow2.f32 %v564_v46  ;;  %604 = vadd.xlane.f32.xlu2 %v603_v53 }
 0x2d7   :  { %1019 = vmatpush.msrb.mxu2 %v1004_v36 }
 0x2d9   :  { %v515_v47 = vpop.xlane.xlu2 %514 }
 0x2da   :  { %v539_v44 = vsub.f32 %v1803_v59, %v515_v47  ;;  %v1003_v59 = vld [vmem:[#allocation2 + $0x48] sm:$0xff] }
 0x2db   :  { %1020 = vmatpush.msrb.mxu2 %v1003_v59 }
 0x2dc   :  { %v1256_v40 = vpop.eup %1255  ;;  %v566_v42 = vmul.f32 1.442695, %v539_v44 }
 0x2dd   :  { %1207 = vmatmul.msk.f32.gmra.mxu1 %vm479_vm0, %v1256_v40  ;;  %v606_v37 = vsel %vm479_vm0, %v1256_v40, 0.0  ;;  %1021 = vmatpush.msrb.mxu2 %v1002_v49 }
 0x2de   :  { %1257 = vpow2.f32 %v566_v42  ;;  %607 = vadd.xlane.f32.xlu2 %v606_v37 }
 0x2df   :  { %1022 = vmatpush.msrb.mxu2 %v1001_v54 }
 0x2e1   :  { %v518_v38 = vpop.xlane.xlu2 %517  ;;  %1023 = vmatpush.msrb.mxu2 %v1000_v45 }
 0x2e2   :  { %v540_v34 = vsub.f32 %v1807_v61, %v518_v38  ;;  %v999_v61 = vld [vmem:[#allocation2 + $0x28] sm:$0xff] }
 0x2e3   :  { %1024 = vmatpush.msrb.mxu2 %v999_v61 }
 0x2e4   :  { %v1258_v33 = vpop.eup %1257  ;;  %v568_v41 = vmul.f32 1.442695, %v540_v34 }
 0x2e5   :  { %1208 = vmatmul.msk.f32.gmra.mxu1 %vm479_vm0, %v1258_v33  ;;  %v609_v50 = vsel %vm479_vm0, %v1258_v33, 0.0  ;;  %1025 = vmatpush.msrb.mxu2 %v998_v48 }
 0x2e6   :  { %1259 = vpow2.f32 %v568_v41  ;;  %610 = vadd.xlane.f32.xlu2 %v609_v50 }
 0x2e7   :  { %1026 = vmatpush.msrb.mxu2 %v997_v0 }
 0x2e9   :  { %v521_v55 = vpop.xlane.xlu2 %520  ;;  %1027 = vmatpush.msrb.mxu2 %v996_v3 }
 0x2ea   :  { %v541_v52 = vsub.f32 %v1811_v63, %v521_v55  ;;  %v995_v63 = vld [vmem:[#allocation2 + $0x8] sm:$0xff] }
 0x2eb   :  { %1028 = vmatpush.msrb.mxu2 %v995_v63 }
 0x2ec   :  { %v1260_v58 = vpop.eup %1259  ;;  %v570_v60 = vmul.f32 1.442695, %v541_v52 }
 0x2ed   :  { %1209 = vmatmul.msk.f32.gmra.mxu1 %vm479_vm0, %v1260_v58  ;;  %v612_v62 = vsel %vm479_vm0, %v1260_v58, 0.0  ;;  %1029 = vmatpush.msrb.mxu2 %v994_v8 }
 0x2ee   :  { %1261 = vpow2.f32 %v570_v60  ;;  %613 = vadd.xlane.f32.xlu2 %v612_v62 }
 0x2f1   :  { %v524_v4 = vpop.xlane.xlu2 %523 }
 0x2f2   :  { %v542_v35 = vsub.f32 %v1815_v2, %v524_v4 }
 0x2f4   :  { %v1262_v5 = vpop.eup %1261  ;;  %v572_v6 = vmul.f32 1.442695, %v542_v35 }
 0x2f5   :  { %1210 = vmatmul.msk.f32.gmra.mxu1 %vm479_vm0, %v1262_v5  ;;  %v615_v9 = vsel %vm479_vm0, %v1262_v5, 0.0 }
 0x2f6   :  { %1263 = vpow2.f32 %v572_v6  ;;  %616 = vadd.xlane.f32.xlu2 %v615_v9 }
 0x2f9   :  { %v527_v51 = vpop.xlane.xlu2 %526 }
 0x2fa   :  { %v543_v10 = vsub.f32 %v1819_v7, %v527_v51 }
 0x2fc   :  { %v1264_v11 = vpop.eup %1263  ;;  %v574_v12 = vmul.f32 1.442695, %v543_v10 }
 0x2fd   :  { %1211 = vmatmul.msk.f32.gmra.mxu1 %vm479_vm0, %v1264_v11  ;;  %v618_v2 = vsel %vm479_vm0, %v1264_v11, 0.0 }
 0x2fe   :  { %1265 = vpow2.f32 %v574_v12  ;;  %619 = vadd.xlane.f32.xlu1 %v618_v2 }
 0x301   :  { %v578_v14 = vpop.xlane.xlu0 %577 }
 0x302   :  { %1267 = vrcp.f32 %v578_v14  ;;  %v635_v1 = vand.u32 2147483648, %v578_v14  ;;  %v633_v44 = vand.u32 2147483647, %v578_v14  ;;  %vm629_vm2 = vweird.f32 %v578_v14 }
 0x304   :  { %v1266_v32 = vpop.eup %1265  ;;  %v636_v42 = vor.u32 1.1754944e-38, %v635_v1  ;;  %vm634_vm4 = vcmp.eq.f32.partialorder %v633_v44, 8.507059e+37 }
 0x305   :  { %1212 = vmatmul.msk.f32.gmra.mxu1 %vm479_vm0, %v1266_v32  ;;  %v621_v13 = vsel %vm479_vm0, %v1266_v32, 0.0 }
 0x306   :  { %622 = vadd.xlane.f32.xlu2 %v621_v13 }
 0x308   :  { %v1268_v15 = vpop.eup %1267 }
 0x309   :  { %v625_v46 = vmul.f32 %v1268_v15, %v578_v14  ;;  %v581_v53 = vpop.xlane.xlu1 %580  ;;  %vm630_vm1 = vweird.f32 %v1268_v15 }
 0x30a   :  { %1269 = vrcp.f32 %v581_v53  ;;  %v889_v7 = vpop.f32.mrf.mxu0  ;;  %vm631_vm3 = vmor %vm629_vm2, %vm630_vm1  ;;  %v649_v33 = vand.u32 2147483648, %v581_v53  ;;  %v647_v49 = vand.u32 2147483647, %v581_v53  ;;  %vm643_vm6 = vweird.f32 %v581_v53 }
 0x30b   :  { %v626_v56 = vsub.f32 1.0, %v625_v46 }
 0x30c   :  { %v650_v45 = vor.u32 1.1754944e-38, %v649_v33  ;;  %vm648_vm8 = vcmp.eq.f32.partialorder %v647_v49, 8.507059e+37 }
 0x30d   :  { %v627_v47 = vmul.f32 %v1268_v15, %v626_v56 }
 0x30f   :  { %v628_v43 = vadd.f32 %v1268_v15, %v627_v47 }
 0x310   :  { %v1270_v40 = vpop.eup %1269 }
 0x311   :  { %v639_v57 = vmul.f32 %v1270_v40, %v581_v53  ;;  %v632_v37 = vsel %vm631_vm3, %v1268_v15, %v628_v43  ;;  %v584_v39 = vpop.xlane.xlu2 %583  ;;  %vm644_vm5 = vweird.f32 %v1270_v40 }
 0x312   :  { %v637_v36 = vsel %vm634_vm4, %v636_v42, %v632_v37  ;;  %1271 = vrcp.f32 %v584_v39  ;;  %v892_v38 = vpop.f32.mrf.mxu0  ;;  %vm645_vm7 = vmor %vm643_vm6, %vm644_vm5  ;;  %v663_v0 = vand.u32 2147483648, %v584_v39  ;;  %v661_v4 = vand.u32 2147483647, %v584_v39 }
 0x313   :  { %v640_v34 = vsub.f32 1.0, %v639_v57  ;;  %v978_v59 = vmul.f32 %v889_v7, %v637_v36  ;;  %vm657_vm10 = vweird.f32 %v584_v39 }
 0x314   :  { %v664_v5 = vor.u32 1.1754944e-38, %v663_v0  ;;  %vm662_vm12 = vcmp.eq.f32.partialorder %v661_v4, 8.507059e+37 }
 0x315   :  { %v641_v41 = vmul.f32 %v1270_v40, %v640_v34  ;;  %1030 = vmatmul.f32.vlgmr.msrb.gmra.mxu2 %v978_v59 }
 0x317   :  { %v642_v50 = vadd.f32 %v1270_v40, %v641_v41 }
 0x318   :  { %v1272_v54 = vpop.eup %1271 }
 0x319   :  { %v653_v55 = vmul.f32 %v1272_v54, %v584_v39  ;;  %v646_v52 = vsel %vm645_vm7, %v1270_v40, %v642_v50  ;;  %v587_v61 = vpop.xlane.xlu2 %586  ;;  %vm658_vm9 = vweird.f32 %v1272_v54 }
 0x31a   :  { %v651_v58 = vsel %vm648_vm8, %v650_v45, %v646_v52  ;;  %1273 = vrcp.f32 %v587_v61  ;;  %v895_v60 = vpop.f32.mrf.mxu0  ;;  %vm659_vm11 = vmor %vm657_vm10, %vm658_vm9  ;;  %v677_v2 = vand.u32 2147483648, %v587_v61  ;;  %v675_v32 = vand.u32 2147483647, %v587_v61 }
 0x31b   :  { %v654_v48 = vsub.f32 1.0, %v653_v55  ;;  %v979_v62 = vmul.f32 %v892_v38, %v651_v58  ;;  %vm671_vm14 = vweird.f32 %v587_v61 }
 0x31c   :  { %v678_v46 = vor.u32 1.1754944e-38, %v677_v2  ;;  %vm676_vm1 = vcmp.eq.f32.partialorder %v675_v32, 8.507059e+37 }
 0x31d   :  { %v655_v3 = vmul.f32 %v1272_v54, %v654_v48  ;;  %1033 = vmatmul.f32.gmra.mxu2 %v979_v62 }
 0x31f   :  { %v656_v35 = vadd.f32 %v1272_v54, %v655_v3 }
 0x320   :  { %v1274_v63 = vpop.eup %1273 }
 0x321   :  { %v667_v6 = vmul.f32 %v1274_v63, %v587_v61  ;;  %v660_v8 = vsel %vm659_vm11, %v1272_v54, %v656_v35  ;;  %v590_v9 = vpop.xlane.xlu2 %589  ;;  %vm672_vm13 = vweird.f32 %v1274_v63 }
 0x322   :  { %v665_v51 = vsel %vm662_vm12, %v664_v5, %v660_v8  ;;  %1275 = vrcp.f32 %v590_v9  ;;  %v898_v10 = vpop.f32.mrf.mxu0  ;;  %vm673_vm15 = vmor %vm671_vm14, %vm672_vm13  ;;  %v691_v43 = vand.u32 2147483648, %v590_v9  ;;  %v689_v57 = vand.u32 2147483647, %v590_v9 }
 0x323   :  { %v668_v11 = vsub.f32 1.0, %v667_v6  ;;  %v980_v12 = vmul.f32 %v895_v60, %v665_v51  ;;  %vm685_vm3 = vweird.f32 %v590_v9 }
 0x324   :  { %v692_v36 = vor.u32 1.1754944e-38, %v691_v43  ;;  %vm690_vm5 = vcmp.eq.f32.partialorder %v689_v57, 8.507059e+37 }
 0x325   :  { %v669_v14 = vmul.f32 %v1274_v63, %v668_v11  ;;  %1036 = vmatmul.f32.gmra.mxu2 %v980_v12 }
 0x327   :  { %v670_v13 = vadd.f32 %v1274_v63, %v669_v14 }
 0x328   :  { %v1276_v15 = vpop.eup %1275 }
 0x329   :  { %v681_v53 = vmul.f32 %v1276_v15, %v590_v9  ;;  %v674_v7 = vsel %vm673_vm15, %v1274_v63, %v670_v13  ;;  %v593_v56 = vpop.xlane.xlu2 %592  ;;  %vm686_vm2 = vweird.f32 %v1276_v15 }
 0x32a   :  { %v679_v1 = vsel %vm676_vm1, %v678_v46, %v674_v7  ;;  %1277 = vrcp.f32 %v593_v56  ;;  %v901_v40 = vpop.f32.mrf.mxu0  ;;  %vm687_vm4 = vmor %vm685_vm3, %vm686_vm2  ;;  %v705_v50 = vand.u32 2147483648, %v593_v56  ;;  %v703_v45 = vand.u32 2147483647, %v593_v56 }
 0x32b   :  { %v682_v47 = vsub.f32 1.0, %v681_v53  ;;  %v981_v44 = vmul.f32 %v898_v10, %v679_v1  ;;  %vm699_vm7 = vweird.f32 %v593_v56 }
 0x32c   :  { %v706_v58 = vor.u32 1.1754944e-38, %v705_v50  ;;  %vm704_vm9 = vcmp.eq.f32.partialorder %v703_v45, 8.507059e+37 }
 0x32d   :  { %v683_v42 = vmul.f32 %v1276_v15, %v682_v47  ;;  %1039 = vmatmul.f32.gmra.mxu2 %v981_v44 }
 0x32f   :  { %v684_v37 = vadd.f32 %v1276_v15, %v683_v42 }
 0x330   :  { %v1278_v39 = vpop.eup %1277 }
 0x331   :  { %v695_v38 = vmul.f32 %v1278_v39, %v593_v56  ;;  %v688_v34 = vsel %vm687_vm4, %v1276_v15, %v684_v37  ;;  %v596_v59 = vpop.xlane.xlu2 %595  ;;  %vm700_vm6 = vweird.f32 %v1278_v39 }
 0x332   :  { %v693_v33 = vsel %vm690_vm5, %v692_v36, %v688_v34  ;;  %1279 = vrcp.f32 %v596_v59  ;;  %v904_v55 = vpop.f32.mrf.mxu0  ;;  %vm701_vm8 = vmor %vm699_vm7, %vm700_vm6  ;;  %v719_v35 = vand.u32 2147483648, %v596_v59  ;;  %v717_v5 = vand.u32 2147483647, %v596_v59 }
 0x333   :  { %v696_v41 = vsub.f32 1.0, %v695_v38  ;;  %v982_v49 = vmul.f32 %v901_v40, %v693_v33  ;;  %vm713_vm11 = vweird.f32 %v596_v59 }
 0x334   :  { %v720_v9 = vor.u32 1.1754944e-38, %v719_v35  ;;  %vm718_vm13 = vcmp.eq.f32.partialorder %v717_v5, 8.507059e+37 }
 0x335   :  { %v697_v54 = vmul.f32 %v1278_v39, %v696_v41  ;;  %1042 = vmatmul.f32.gmra.mxu2 %v982_v49 }
 0x337   :  { %v698_v52 = vadd.f32 %v1278_v39, %v697_v54 }
 0x338   :  { %v1280_v61 = vpop.eup %1279 }
 0x339   :  { %v709_v60 = vmul.f32 %v1280_v61, %v596_v59  ;;  %v702_v48 = vsel %vm701_vm8, %v1278_v39, %v698_v52  ;;  %v599_v62 = vpop.xlane.xlu2 %598  ;;  %vm714_vm10 = vweird.f32 %v1280_v61 }
 0x33a   :  { %v707_v0 = vsel %vm704_vm9, %v706_v58, %v702_v48  ;;  %1281 = vrcp.f32 %v599_v62  ;;  %vm715_vm12 = vmor %vm713_vm11, %vm714_vm10  ;;  %v907_v51 = vpop.f32.mrf.mxu0  ;;  %v733_v13 = vand.u32 2147483648, %v599_v62  ;;  %v731_v46 = vand.u32 2147483647, %v599_v62 }
 0x33b   :  { %v710_v3 = vsub.f32 1.0, %v709_v60  ;;  %v983_v4 = vmul.f32 %v904_v55, %v707_v0  ;;  %vm727_vm15 = vweird.f32 %v599_v62 }
 0x33c   :  { %v734_v56 = vor.u32 1.1754944e-38, %v733_v13  ;;  %vm732_vm2 = vcmp.eq.f32.partialorder %v731_v46, 8.507059e+37 }
 0x33d   :  { %v711_v63 = vmul.f32 %v1280_v61, %v710_v3  ;;  %1045 = vmatmul.f32.gmra.mxu2 %v983_v4 }
 0x33f   :  { %v712_v6 = vadd.f32 %v1280_v61, %v711_v63 }
 0x340   :  { %v1282_v8 = vpop.eup %1281 }
 0x341   :  { %v723_v10 = vmul.f32 %v1282_v8, %v599_v62  ;;  %v716_v11 = vsel %vm715_vm12, %v1280_v61, %v712_v6  ;;  %v602_v12 = vpop.xlane.xlu2 %601  ;;  %vm728_vm14 = vweird.f32 %v1282_v8 }
 0x342   :  { %v721_v2 = vsel %vm718_vm13, %v720_v9, %v716_v11  ;;  %1283 = vrcp.f32 %v602_v12  ;;  %vm729_vm1 = vmor %vm727_vm15, %vm728_vm14  ;;  %v910_v40 = vpop.f32.mrf.mxu0  ;;  %v747_v39 = vand.u32 2147483648, %v602_v12  ;;  %v745_v38 = vand.u32 2147483647, %v602_v12 }
 0x343   :  { %v724_v14 = vsub.f32 1.0, %v723_v10  ;;  %v984_v32 = vmul.f32 %v907_v51, %v721_v2  ;;  %vm741_vm4 = vweird.f32 %v602_v12 }
 0x344   :  { %v748_v33 = vor.u32 1.1754944e-38, %v747_v39  ;;  %vm746_vm6 = vcmp.eq.f32.partialorder %v745_v38, 8.507059e+37 }
 0x345   :  { %v725_v15 = vmul.f32 %v1282_v8, %v724_v14  ;;  %1048 = vmatmul.f32.gmra.mxu2 %v984_v32 }
 0x347   :  { %v726_v53 = vadd.f32 %v1282_v8, %v725_v15 }
 0x348   :  { %v1284_v7 = vpop.eup %1283 }
 0x349   :  { %v737_v1 = vmul.f32 %v1284_v7, %v602_v12  ;;  %v730_v47 = vsel %vm729_vm1, %v1282_v8, %v726_v53  ;;  %v605_v44 = vpop.xlane.xlu2 %604  ;;  %vm742_vm3 = vweird.f32 %v1284_v7 }
 0x34a   :  { %v735_v43 = vsel %vm732_vm2, %v734_v56, %v730_v47  ;;  %1285 = vrcp.f32 %v605_v44  ;;  %v954_v42 = vpop.f32.mrf.mxu1  ;;  %vm743_vm5 = vmor %vm741_vm4, %vm742_vm3  ;;  %v761_v61 = vand.u32 2147483648, %v605_v44  ;;  %v759_v60 = vand.u32 2147483647, %v605_v44 }
 0x34b   :  { %v738_v57 = vsub.f32 1.0, %v737_v1  ;;  %v985_v37 = vmul.f32 %v910_v40, %v735_v43  ;;  %vm755_vm8 = vweird.f32 %v605_v44 }
 0x34c   :  { %v762_v0 = vor.u32 1.1754944e-38, %v761_v61  ;;  %vm760_vm10 = vcmp.eq.f32.partialorder %v759_v60, 8.507059e+37 }
 0x34d   :  { %v739_v36 = vmul.f32 %v1284_v7, %v738_v57  ;;  %1051 = vmatmul.f32.gmra.mxu2 %v985_v37 }
 0x34f   :  { %v740_v34 = vadd.f32 %v1284_v7, %v739_v36 }
 0x350   :  { %v1286_v59 = vpop.eup %1285 }
 0x351   :  { %v751_v41 = vmul.f32 %v1286_v59, %v605_v44  ;;  %v744_v49 = vsel %vm743_vm5, %v1284_v7, %v740_v34  ;;  %v608_v50 = vpop.xlane.xlu2 %607  ;;  %vm756_vm7 = vweird.f32 %v1286_v59 }
 0x352   :  { %v749_v54 = vsel %vm746_vm6, %v748_v33, %v744_v49  ;;  %1287 = vrcp.f32 %v608_v50  ;;  %v957_v45 = vpop.f32.mrf.mxu1  ;;  %vm757_vm9 = vmor %vm755_vm8, %vm756_vm7  ;;  %v775_v9 = vand.u32 2147483648, %v608_v50  ;;  %v773_v10 = vand.u32 2147483647, %v608_v50 }
 0x353   :  { %v752_v55 = vsub.f32 1.0, %v751_v41  ;;  %v986_v52 = vmul.f32 %v954_v42, %v749_v54  ;;  %vm769_vm12 = vweird.f32 %v608_v50 }
 0x354   :  { %v776_v2 = vor.u32 1.1754944e-38, %v775_v9  ;;  %vm774_vm14 = vcmp.eq.f32.partialorder %v773_v10, 8.507059e+37 }
 0x355   :  { %v753_v58 = vmul.f32 %v1286_v59, %v752_v55  ;;  %1054 = vmatmul.f32.gmra.mxu2 %v986_v52 }
 0x357   :  { %v754_v48 = vadd.f32 %v1286_v59, %v753_v58 }
 0x358   :  { %v1288_v62 = vpop.eup %1287 }
 0x359   :  { %v765_v3 = vmul.f32 %v1288_v62, %v608_v50  ;;  %v758_v4 = vsel %vm757_vm9, %v1286_v59, %v754_v48  ;;  %v611_v35 = vpop.xlane.xlu2 %610  ;;  %vm770_vm11 = vweird.f32 %v1288_v62 }
 0x35a   :  { %v763_v63 = vsel %vm760_vm10, %v762_v0, %v758_v4  ;;  %1289 = vrcp.f32 %v611_v35  ;;  %v960_v5 = vpop.f32.mrf.mxu1  ;;  %vm771_vm13 = vmor %vm769_vm12, %vm770_vm11  ;;  %v789_v56 = vand.u32 2147483648, %v611_v35  ;;  %v787_v47 = vand.u32 2147483647, %v611_v35 }
 0x35b   :  { %v766_v6 = vsub.f32 1.0, %v765_v3  ;;  %v987_v8 = vmul.f32 %v957_v45, %v763_v63  ;;  %vm783_vm1 = vweird.f32 %v611_v35 }
 0x35c   :  { %v790_v40 = vor.u32 1.1754944e-38, %v789_v56  ;;  %vm788_vm3 = vcmp.eq.f32.partialorder %v787_v47, 8.507059e+37 }
 0x35d   :  { %v767_v51 = vmul.f32 %v1288_v62, %v766_v6  ;;  %1057 = vmatmul.f32.gmra.mxu2 %v987_v8 }
 0x35f   :  { %v768_v11 = vadd.f32 %v1288_v62, %v767_v51 }
 0x360   :  { %v1290_v12 = vpop.eup %1289 }
 0x361   :  { %v779_v14 = vmul.f32 %v1290_v12, %v611_v35  ;;  %v772_v32 = vsel %vm771_vm13, %v1288_v62, %v768_v11  ;;  %v614_v13 = vpop.xlane.xlu2 %613  ;;  %vm784_vm15 = vweird.f32 %v1290_v12 }
 0x362   :  { %v777_v15 = vsel %vm774_vm14, %v776_v2, %v772_v32  ;;  %1291 = vrcp.f32 %v614_v13  ;;  %v963_v46 = vpop.f32.mrf.mxu1  ;;  %vm785_vm2 = vmor %vm783_vm1, %vm784_vm15  ;;  %v803_v34 = vand.u32 2147483648, %v614_v13  ;;  %v801_v41 = vand.u32 2147483647, %v614_v13 }
 0x363   :  { %v780_v53 = vsub.f32 1.0, %v779_v14  ;;  %v988_v7 = vmul.f32 %v960_v5, %v777_v15  ;;  %vm797_vm5 = vweird.f32 %v614_v13 }
 0x364   :  { %v804_v54 = vor.u32 1.1754944e-38, %v803_v34  ;;  %vm802_vm7 = vcmp.eq.f32.partialorder %v801_v41, 8.507059e+37 }
 0x365   :  { %v781_v1 = vmul.f32 %v1290_v12, %v780_v53  ;;  %1060 = vmatmul.f32.gmra.mxu2 %v988_v7 }
 0x367   :  { %v782_v44 = vadd.f32 %v1290_v12, %v781_v1 }
 0x368   :  { %v1292_v43 = vpop.eup %1291 }
 0x369   :  { %v793_v42 = vmul.f32 %v1292_v43, %v614_v13  ;;  %v786_v57 = vsel %vm785_vm2, %v1290_v12, %v782_v44  ;;  %v617_v37 = vpop.xlane.xlu2 %616  ;;  %vm798_vm4 = vweird.f32 %v1292_v43 }
 0x36a   :  { %v791_v39 = vsel %vm788_vm3, %v790_v40, %v786_v57  ;;  %1293 = vrcp.f32 %v617_v37  ;;  %v966_v59 = vpop.f32.mrf.mxu1  ;;  %vm799_vm6 = vmor %vm797_vm5, %vm798_vm4  ;;  %v817_v48 = vand.u32 2147483648, %v617_v37  ;;  %v815_v0 = vand.u32 2147483647, %v617_v37 }
 0x36b   :  { %v794_v36 = vsub.f32 1.0, %v793_v42  ;;  %v989_v38 = vmul.f32 %v963_v46, %v791_v39  ;;  %vm811_vm9 = vweird.f32 %v617_v37 }
 0x36c   :  { %v818_v63 = vor.u32 1.1754944e-38, %v817_v48  ;;  %vm816_vm11 = vcmp.eq.f32.partialorder %v815_v0, 8.507059e+37 }
 0x36d   :  { %v795_v33 = vmul.f32 %v1292_v43, %v794_v36  ;;  %1063 = vmatmul.f32.gmra.mxu2 %v989_v38  ;;  %v1234_v38 = vld [vmem:[#allocation4] ss:$0 sm:$0xff] }
 0x36f   :  { %v796_v49 = vadd.f32 %v1292_v43, %v795_v33 }
 0x370   :  { %v1294_v50 = vpop.eup %1293 }
 0x371   :  { %v807_v45 = vmul.f32 %v1294_v50, %v617_v37  ;;  %v800_v55 = vsel %vm799_vm6, %v1292_v43, %v796_v49  ;;  %v620_v52 = vpop.xlane.xlu1 %619  ;;  %vm812_vm8 = vweird.f32 %v1294_v50 }
 0x372   :  { %v805_v61 = vsel %vm802_vm7, %v804_v54, %v800_v55  ;;  %1295 = vrcp.f32 %v620_v52  ;;  %v969_v3 = vpop.f32.mrf.mxu1  ;;  %vm813_vm10 = vmor %vm811_vm9, %vm812_vm8  ;;  %v831_v11 = vand.u32 2147483648, %v620_v52  ;;  %v829_v2 = vand.u32 2147483647, %v620_v52 }
 0x373   :  { %v808_v58 = vsub.f32 1.0, %v807_v45  ;;  %v990_v60 = vmul.f32 %v966_v59, %v805_v61  ;;  %vm825_vm13 = vweird.f32 %v620_v52 }
 0x374   :  { %v832_v13 = vor.u32 1.1754944e-38, %v831_v11  ;;  %vm830_vm15 = vcmp.eq.f32.partialorder %v829_v2, 8.507059e+37 }
 0x375   :  { %v809_v62 = vmul.f32 %v1294_v50, %v808_v58  ;;  %1066 = vmatmul.f32.gmra.mxu2 %v990_v60 }
 0x377   :  { %v810_v4 = vadd.f32 %v1294_v50, %v809_v62 }
 0x378   :  { %v1296_v35 = vpop.eup %1295 }
 0x379   :  { %v821_v5 = vmul.f32 %v1296_v35, %v620_v52  ;;  %v814_v6 = vsel %vm813_vm10, %v1294_v50, %v810_v4  ;;  %v623_v8 = vpop.xlane.xlu2 %622  ;;  %vm826_vm12 = vweird.f32 %v1296_v35 }
 0x37a   :  { %v819_v9 = vsel %vm816_vm11, %v818_v63, %v814_v6  ;;  %1297 = vrcp.f32 %v623_v8  ;;  %vm827_vm14 = vmor %vm825_vm13, %vm826_vm12  ;;  %v972_v15 = vpop.f32.mrf.mxu1  ;;  %v845_v47 = vand.u32 2147483648, %v623_v8  ;;  %v843_v43 = vand.u32 2147483647, %v623_v8 }
 0x37b   :  { %v822_v51 = vsub.f32 1.0, %v821_v5  ;;  %v991_v10 = vmul.f32 %v969_v3, %v819_v9  ;;  %vm839_vm2 = vweird.f32 %v623_v8 }
 0x37c   :  { %v846_v42 = vor.u32 1.1754944e-38, %v845_v47  ;;  %vm844_vm4 = vcmp.eq.f32.partialorder %v843_v43, 8.507059e+37 }
 0x37d   :  { %v823_v12 = vmul.f32 %v1296_v35, %v822_v51  ;;  %1069 = vmatmul.f32.gmra.mxu2 %v991_v10 }
 0x37f   :  { %v824_v14 = vadd.f32 %v1296_v35, %v823_v12 }
 0x380   :  { %v1298_v32 = vpop.eup %1297 }
 0x381   :  { %v835_v46 = vmul.f32 %v1298_v32, %v623_v8  ;;  %v828_v53 = vsel %vm827_vm14, %v1296_v35, %v824_v14  ;;  %vm840_vm1 = vweird.f32 %v1298_v32 }
 0x382   :  { %v833_v7 = vsel %vm830_vm15, %v832_v13, %v828_v53  ;;  %vm841_vm3 = vmor %vm839_vm2, %vm840_vm1  ;;  %v975_v39 = vpop.f32.mrf.mxu1 }
 0x383   :  { %v836_v56 = vsub.f32 1.0, %v835_v46  ;;  %v992_v1 = vmul.f32 %v972_v15, %v833_v7 }
 0x385   :  { %v837_v44 = vmul.f32 %v1298_v32, %v836_v56  ;;  %1072 = vmatmul.f32.gmra.mxu2 %v992_v1 }
 0x387   :  { %v838_v40 = vadd.f32 %v1298_v32, %v837_v44 }
 0x389   :  { %v842_v57 = vsel %vm841_vm3, %v1298_v32, %v838_v40 }
 0x38a   :  { %v847_v37 = vsel %vm844_vm4, %v846_v42, %v842_v57 }
 0x38b   :  { %v993_v36 = vmul.f32 %v975_v39, %v847_v37 }
 0x38d   :  { %1075 = vmatmul.f32.gmra.mxu2 %v993_v36 }
 0x398   :  { %v1031_v34 = vpop.f32.mrf.mxu2 }
 0x399   :  { %v1032_v59 = vadd.f32 %v1234_v38, %v1031_v34 }
 0x39b   :  { %v1079_v33 = vadd.f32 %v1032_v59, %v1633_v17 }
 0x39d   :  { %1095 = vxpose.xlu1.b32.start [1/8] (short) %v1079_v33, 128 }
 0x3a0   :  { %v1034_v41 = vpop.f32.mrf.mxu2 }
 0x3a1   :  { %v1035_v49 = vadd.f32 %v1234_v38, %v1034_v41 }
 0x3a3   :  { %v1080_v50 = vadd.f32 %v1035_v49, %v1641_v19 }
 0x3a5   :  { %1096 = vxpose.xlu1.b32.cont [2/8] (short) %v1080_v50, 128 }
 0x3a8   :  { %v1037_v54 = vpop.f32.mrf.mxu2 }
 0x3a9   :  { %v1038_v45 = vadd.f32 %v1234_v38, %v1037_v54 }
 0x3ab   :  { %v1081_v55 = vadd.f32 %v1038_v45, %v1649_v21 }
 0x3ad   :  { %1097 = vxpose.xlu1.b32.cont [3/8] (short) %v1081_v55, 128 }
 0x3b0   :  { %v1040_v52 = vpop.f32.mrf.mxu2 }
 0x3b1   :  { %v1041_v61 = vadd.f32 %v1234_v38, %v1040_v52 }
 0x3b3   :  { %v1082_v58 = vadd.f32 %v1041_v61, %v1657_v23 }
 0x3b5   :  { %1098 = vxpose.xlu1.b32.cont [4/8] (short) %v1082_v58, 128 }
 0x3b8   :  { %v1043_v60 = vpop.f32.mrf.mxu2 }
 0x3b9   :  { %v1044_v48 = vadd.f32 %v1234_v38, %v1043_v60 }
 0x3bb   :  { %v1083_v17 = vadd.f32 %v1044_v48, %v1665_v25 }
 0x3bd   :  { %1099 = vxpose.xlu1.b32.cont [5/8] (short) %v1083_v17, 128 }
 0x3c0   :  { %v1046_v62 = vpop.f32.mrf.mxu2 }
 0x3c1   :  { %v1047_v0 = vadd.f32 %v1234_v38, %v1046_v62 }
 0x3c3   :  { %v1084_v19 = vadd.f32 %v1047_v0, %v1673_v27 }
 0x3c5   :  { %1100 = vxpose.xlu1.b32.cont [6/8] (short) %v1084_v19, 128 }
 0x3c8   :  { %v1049_v3 = vpop.f32.mrf.mxu2 }
 0x3c9   :  { %v1050_v4 = vadd.f32 %v1234_v38, %v1049_v3 }
 0x3cb   :  { %v1085_v21 = vadd.f32 %v1050_v4, %v1681_v29 }
 0x3cd   :  { %1101 = vxpose.xlu1.b32.cont [7/8] (short) %v1085_v21, 128 }
 0x3d0   :  { %v1052_v35 = vpop.f32.mrf.mxu2 }
 0x3d1   :  { %v1053_v63 = vadd.f32 %v1234_v38, %v1052_v35 }
 0x3d3   :  { %v1086_v23 = vadd.f32 %v1053_v63, %v1689_v31 }
 0x3d5   :  { %1102 = vxpose.xlu1.b32.end [8/8] (short) %v1086_v23, 128 }
 0x3d8   :  { %v1055_v5 = vpop.f32.mrf.mxu2 }
 0x3d9   :  { %v1056_v6 = vadd.f32 %v1234_v38, %v1055_v5 }
 0x3db   :  { %v1087_v25 = vadd.f32 %v1056_v6, %v1631_v16 }
 0x3dd   :  { %1127 = vxpose.xlu2.b32.start [1/8] (short) %v1087_v25, 128 }
 0x3e0   :  { %v1058_v8 = vpop.f32.mrf.mxu2 }
 0x3e1   :  { %v1059_v9 = vadd.f32 %v1234_v38, %v1058_v8 }
 0x3e3   :  { %v1088_v27 = vadd.f32 %v1059_v9, %v1639_v18 }
 0x3e5   :  { %1128 = vxpose.xlu2.b32.cont [2/8] (short) %v1088_v27, 128 }
 0x3e8   :  { %v1061_v51 = vpop.f32.mrf.mxu2 }
 0x3e9   :  { %v1062_v10 = vadd.f32 %v1234_v38, %v1061_v51 }
 0x3eb   :  { %v1089_v29 = vadd.f32 %v1062_v10, %v1647_v20 }
 0x3ed   :  { %1129 = vxpose.xlu2.b32.cont [3/8] (short) %v1089_v29, 128 }
 0x3f0   :  { %v1064_v11 = vpop.f32.mrf.mxu2 }
 0x3f1   :  { %v1065_v12 = vadd.f32 %v1234_v38, %v1064_v11 }
 0x3f3   :  { %v1090_v31 = vadd.f32 %v1065_v12, %v1655_v22 }
 0x3f5   :  { %1130 = vxpose.xlu2.b32.cont [4/8] (short) %v1090_v31, 128 }
 0x3f8   :  { %v1067_v2 = vpop.f32.mrf.mxu2 }
 0x3f9   :  { %v1068_v14 = vadd.f32 %v1234_v38, %v1067_v2 }
 0x3fb   :  { %v1091_v16 = vadd.f32 %v1068_v14, %v1663_v24 }
 0x3fd   :  { %1131 = vxpose.xlu2.b32.cont [5/8] (short) %v1091_v16, 128 }
 0x400   :  { %v1070_v32 = vpop.f32.mrf.mxu2 }
 0x401   :  { %v1071_v13 = vadd.f32 %v1234_v38, %v1070_v32 }
 0x403   :  { %v1092_v18 = vadd.f32 %v1071_v13, %v1671_v26 }
 0x405   :  { %1132 = vxpose.xlu2.b32.cont [6/8] (short) %v1092_v18, 128 }
 0x408   :  { %v1073_v15 = vpop.f32.mrf.mxu2 }
 0x409   :  { %v1074_v46 = vadd.f32 %v1234_v38, %v1073_v15 }
 0x40b   :  { %v1093_v20 = vadd.f32 %v1074_v46, %v1679_v28 }
 0x40d   :  { %1133 = vxpose.xlu2.b32.cont [7/8] (short) %v1093_v20, 128 }
 0x410   :  { %v1076_v53 = vpop.f32.mrf.mxu2 }
 0x411   :  { %v1077_v7 = vadd.f32 %v1234_v38, %v1076_v53 }
 0x413   :  { %v1094_v22 = vadd.f32 %v1077_v7, %v1687_v30 }
 0x415   :  { %1134 = vxpose.xlu2.b32.end [8/8] (short) %v1094_v22, 128 }
 0x441   :  { %v1111_v56 = vpop.trf.xlu1 }
 0x442   :  { %1159 = vst.msk [vmem:[%s2016_s5] sm:$0xff] %vm479_vm0, %v1111_v56 }
 0x449   :  { %v1112_v24 = vpop.trf.xlu1 }
 0x44a   :  { %1160 = vst.msk [vmem:[%s2016_s5 + $0x8] sm:$0xff] %vm479_vm0, %v1112_v24 }
 0x451   :  { %v1113_v26 = vpop.trf.xlu1 }
 0x452   :  { %1161 = vst.msk [vmem:[%s2016_s5 + $0x10] sm:$0xff] %vm479_vm0, %v1113_v26 }
 0x459   :  { %v1114_v28 = vpop.trf.xlu1 }
 0x45a   :  { %1162 = vst.msk [vmem:[%s2016_s5 + $0x18] sm:$0xff] %vm479_vm0, %v1114_v28 }
 0x461   :  { %v1115_v30 = vpop.trf.xlu1 }
 0x462   :  { %1163 = vst.msk [vmem:[%s2016_s5 + $0x20] sm:$0xff] %vm479_vm0, %v1115_v30 }
 0x469   :  { %v1116_v47 = vpop.trf.xlu1 }
 0x46a   :  { %1164 = vst.msk [vmem:[%s2016_s5 + $0x28] sm:$0xff] %vm479_vm0, %v1116_v47 }
 0x471   :  { %v1117_v43 = vpop.trf.xlu1 }
 0x472   :  { %1165 = vst.msk [vmem:[%s2016_s5 + $0x30] sm:$0xff] %vm479_vm0, %v1117_v43 }
 0x476   :  { %v1143_v1 = vpop.trf.xlu2 }
 0x477   :  { %1175 = vst.msk [vmem:[%s2016_s5 + $0x80] sm:$0xff] %vm479_vm0, %v1143_v1 }
 0x479   :  { %v1118_v42 = vpop.trf.xlu1 }
 0x47a   :  { %1166 = vst.msk [vmem:[%s2016_s5 + $0x38] sm:$0xff] %vm479_vm0, %v1118_v42 }
 0x47e   :  { %v1144_v44 = vpop.trf.xlu2 }
 0x47f   :  { %1176 = vst.msk [vmem:[%s2016_s5 + $0x88] sm:$0xff] %vm479_vm0, %v1144_v44 }
 0x481   :  { %v1119_v37 = vpop.trf.xlu1 }
 0x482   :  { %1167 = vst.msk [vmem:[%s2016_s5 + $0x40] sm:$0xff] %vm479_vm0, %v1119_v37 }
 0x486   :  { %v1145_v40 = vpop.trf.xlu2 }
 0x487   :  { %1177 = vst.msk [vmem:[%s2016_s5 + $0x90] sm:$0xff] %vm479_vm0, %v1145_v40 }
 0x489   :  { %v1120_v36 = vpop.trf.xlu1 }
 0x48a   :  { %1168 = vst.msk [vmem:[%s2016_s5 + $0x48] sm:$0xff] %vm479_vm0, %v1120_v36 }
 0x48e   :  { %v1146_v57 = vpop.trf.xlu2 }
 0x48f   :  { %1178 = vst.msk [vmem:[%s2016_s5 + $0x98] sm:$0xff] %vm479_vm0, %v1146_v57 }
 0x491   :  { %v1121_v34 = vpop.trf.xlu1 }
 0x492   :  { %1169 = vst.msk [vmem:[%s2016_s5 + $0x50] sm:$0xff] %vm479_vm0, %v1121_v34 }
 0x496   :  { %v1147_v39 = vpop.trf.xlu2 }
 0x497   :  { %1179 = vst.msk [vmem:[%s2016_s5 + $0xa0] sm:$0xff] %vm479_vm0, %v1147_v39 }
 0x499   :  { %v1122_v33 = vpop.trf.xlu1 }
 0x49a   :  { %1170 = vst.msk [vmem:[%s2016_s5 + $0x58] sm:$0xff] %vm479_vm0, %v1122_v33 }
 0x49e   :  { %v1148_v38 = vpop.trf.xlu2 }
 0x49f   :  { %1180 = vst.msk [vmem:[%s2016_s5 + $0xa8] sm:$0xff] %vm479_vm0, %v1148_v38 }
 0x4a1   :  { %v1123_v49 = vpop.trf.xlu1 }
 0x4a2   :  { %1171 = vst.msk [vmem:[%s2016_s5 + $0x60] sm:$0xff] %vm479_vm0, %v1123_v49 }
 0x4a6   :  { %v1149_v59 = vpop.trf.xlu2 }
 0x4a7   :  { %1181 = vst.msk [vmem:[%s2016_s5 + $0xb0] sm:$0xff] %vm479_vm0, %v1149_v59 }
 0x4a9   :  { %v1124_v54 = vpop.trf.xlu1 }
 0x4aa   :  { %1172 = vst.msk [vmem:[%s2016_s5 + $0x68] sm:$0xff] %vm479_vm0, %v1124_v54 }
 0x4ae   :  { %v1150_v41 = vpop.trf.xlu2 }
 0x4af   :  { %1182 = vst.msk [vmem:[%s2016_s5 + $0xb8] sm:$0xff] %vm479_vm0, %v1150_v41 }
 0x4b1   :  { %v1125_v55 = vpop.trf.xlu1 }
 0x4b2   :  { %1173 = vst.msk [vmem:[%s2016_s5 + $0x70] sm:$0xff] %vm479_vm0, %v1125_v55 }
 0x4b6   :  { %v1151_v50 = vpop.trf.xlu2 }
 0x4b7   :  { %1183 = vst.msk [vmem:[%s2016_s5 + $0xc0] sm:$0xff] %vm479_vm0, %v1151_v50 }
 0x4b9   :  { %v1126_v61 = vpop.trf.xlu1 }
 0x4ba   :  { %1174 = vst.msk [vmem:[%s2016_s5 + $0x78] sm:$0xff] %vm479_vm0, %v1126_v61 }
 0x4be   :  { %v1152_v45 = vpop.trf.xlu2 }
 0x4bf   :  { %1184 = vst.msk [vmem:[%s2016_s5 + $0xc8] sm:$0xff] %vm479_vm0, %v1152_v45 }
 0x4c6   :  { %v1153_v52 = vpop.trf.xlu2 }
 0x4c7   :  { %1185 = vst.msk [vmem:[%s2016_s5 + $0xd0] sm:$0xff] %vm479_vm0, %v1153_v52 }
 0x4ce   :  { %v1154_v58 = vpop.trf.xlu2 }
 0x4cf   :  { %1186 = vst.msk [vmem:[%s2016_s5 + $0xd8] sm:$0xff] %vm479_vm0, %v1154_v58 }
 0x4d6   :  { %v1155_v60 = vpop.trf.xlu2 }
 0x4d7   :  { %1187 = vst.msk [vmem:[%s2016_s5 + $0xe0] sm:$0xff] %vm479_vm0, %v1155_v60 }
 0x4de   :  { %v1156_v48 = vpop.trf.xlu2 }
 0x4df   :  { %1188 = vst.msk [vmem:[%s2016_s5 + $0xe8] sm:$0xff] %vm479_vm0, %v1156_v48 }
 0x4e6   :  { %v1157_v17 = vpop.trf.xlu2 }
 0x4e7   :  { %1189 = vst.msk [vmem:[%s2016_s5 + $0xf0] sm:$0xff] %vm479_vm0, %v1157_v17 }
 0x4ee   :  { %v1158_v62 = vpop.trf.xlu2 }
 0x4ef   :  { %1190 = vst.msk [vmem:[%s2016_s5 + $0xf8] sm:$0xff] %vm479_vm0, %v1158_v62 }
 0x4f0   :  { %1195 = vsyncpa [#allocation3], 1 }
 0x4f1   :  { %1196 = vsyncpa [#allocation5], 1 }

</bundles_post_ra>
